<compile_context>
chip_gen: v7x
topology: tpu7x:2x2x1
jax: 0.10.0
libtpu: 0.0.40
codegen_flags: <defaults>
</compile_context>

<pallas_src>
import functools

import jax
import jax.numpy as jnp
from jax.experimental import pallas as pl
from jax.experimental.pallas import tpu as pltpu

BN_EPS = 1e-5


# ----------------------------- Pallas kernels --------------------------------
def _conv_stats_kernel(x_ref, w_ref, scale_ref, shift_ref, inter_ref, valid_ref,
                       y_ref, stats_ref, x_scr, tap_scr,
                       *, H, W, apply_act, pack_padded):
    """One image: [optional BN-affine+ReLU of input] -> 3x3 conv -> partial stats.

    x_ref:     [Cin, Ppad]    padded-flat input slab (bf16)
    w_ref:     [Cout, 9*Cin]  folded conv weight (bf16)
    scale_ref: [Cin, 1]       previous-layer BN scale (f32, used if apply_act)
    shift_ref: [Cin, 1]       previous-layer BN shift (f32, used if apply_act)
    inter_ref: [1, Ppad]      1.0 on interior (real pixel) positions, else 0.0
    valid_ref: [1, Mp]        1.0 on valid output columns (w < W), else 0.0
    y_ref:     [Cout, Ppad]   (pack_padded)  conv re-packed into padded layout
               [Cout, Mp]     (else)         conv in compact layout
    stats_ref: [Cout, 2]      per-image (sum, sum_sq) over valid positions (f32)
    x_scr:     [Cin, Ppad]    bf16 scratch for the activated slab (apply_act only)
    tap_scr:   [9*Cin, Mp]    bf16 scratch staging the 9 shifted taps
    """
    Wp = W + 2
    Mp = H * Wp
    cin = x_ref.shape[0]
    cout = w_ref.shape[0]

    if apply_act:
        # Previous stage's BN affine + ReLU (f32 math), re-zero the padding ring
        # so it acts as zero padding for this conv, then cast to bf16 ONCE.
        x = x_ref[...].astype(jnp.float32)
        x = jnp.maximum(x * scale_ref[...] + shift_ref[...], 0.0) * inter_ref[...]
        x_scr[...] = x.astype(jnp.bfloat16)
        src = x_scr
    else:
        # Stage 1: the slab is already the untouched bf16 padded input -- slice
        # taps straight from x_ref, no scratch round trip.
        src = x_ref

    # Stage the 9 shifted taps into the preallocated bf16 scratch (no 9x value
    # concatenate living in vregs), then one K = 9*Cin MXU matmul.
    for dy in range(3):
        for dx in range(3):
            t = dy * 3 + dx
            tap_scr[pl.ds(t * cin, cin), :] = src[:, pl.ds(dy * Wp + dx, Mp)]
    conv = jnp.dot(w_ref[...], tap_scr[...],
                   preferred_element_type=jnp.float32)            # [Cout, Mp] f32
    conv = conv * valid_ref[...]                                  # zero garbage cols

    # Partial BatchNorm statistics (training mode) for this image, from the f32
    # accumulated conv (before any bf16 rounding of the stored activation).
    # TODO(synk): E[x^2]-mean^2 in f32 can cancel for large-mean activations;
    # switch to a compensated / two-pass scheme if this feeds real training.
    s = jnp.sum(conv, axis=1, keepdims=True)                      # [Cout, 1]
    ss = jnp.sum(conv * conv, axis=1, keepdims=True)              # [Cout, 1]
    stats_ref[...] = jnp.concatenate([s, ss], axis=1)             # [Cout, 2]

    if pack_padded:
        # Store at lane offset W+3 so the result is directly the next conv's
        # padded input; only the two small border ranges are zeroed (no
        # whole-slab lane shift / zero concat).
        lead = W + 3                                   # top pad row + first left pad
        y_ref[:, :lead] = jnp.zeros((cout, lead), y_ref.dtype)
        y_ref[:, lead:lead + Mp] = conv.astype(y_ref.dtype)
        y_ref[:, lead + Mp:] = jnp.zeros((cout, y_ref.shape[-1] - lead - Mp),
                                         y_ref.dtype)
    else:
        y_ref[...] = conv.astype(y_ref.dtype)


def _bn_relu_unpad_kernel(y_ref, scale_ref, shift_ref, o_ref, *, H, W):
    """Final epilogue: relu(y * scale + shift) + un-pad -> lane-dense [C, H*W]."""
    Wp = W + 2
    act = jnp.maximum(y_ref[...] * scale_ref[...] + shift_ref[...], 0.0)
    # Gather the W interior columns of each row and emit one lane-dense store.
    # TODO(synk): for large H replace this static row loop with a row-tiled grid.
    rows = [act[:, h * Wp:h * Wp + W] for h in range(H)]
    o_ref[...] = jnp.concatenate(rows, axis=1).astype(o_ref.dtype)


# ------------------------------ JAX wrappers ----------------------------------
def _fold_weight(w_oihw):
    """[Cout, Cin, 3, 3] -> [Cout, 9*Cin] (bf16), matching the tap staging order."""
    cout, cin = w_oihw.shape[0], w_oihw.shape[1]
    return jnp.transpose(w_oihw, (0, 2, 3, 1)).reshape(cout, 9 * cin).astype(jnp.bfloat16)


def _conv_stage(xp, w_cat, scale_in, shift_in, inter, valid, *, H, W,
                apply_act, pack_padded, out_dtype):
    n, cin, ppad = xp.shape
    cout = w_cat.shape[0]
    wp = W + 2
    mp = H * wp
    out_cols = ppad if pack_padded else mp
    out_itemsize = jnp.dtype(out_dtype).itemsize

    kernel = functools.partial(_conv_stats_kernel, H=H, W=W,
                               apply_act=apply_act, pack_padded=pack_padded)

    flops = 2 * n * mp * 9 * cin * cout
    bytes_accessed = (xp.size * xp.dtype.itemsize + w_cat.size * 2
                      + n * cout * out_cols * out_itemsize + n * cout * 2 * 4)

    # Block footprint: double-buffered in/out blocks + scratches + small operands.
    block_bytes = (2 * cin * ppad * xp.dtype.itemsize           # input (dbl buf)
                   + 2 * cout * out_cols * out_itemsize         # output (dbl buf)
                   + cin * ppad * 2 + 9 * cin * mp * 2          # bf16 scratches
                   + cout * 9 * cin * 2                         # weight
                   + (2 * cin + ppad + mp) * 4                  # affine + masks
                   + cout * mp * 4)                             # f32 conv value
    vmem_limit = int(min(max(3 * block_bytes + (8 << 20), 32 << 20), 64 << 20))

    y, stats = pl.pallas_call(
        kernel,
        out_shape=(jax.ShapeDtypeStruct((n, cout, out_cols), out_dtype),
                   jax.ShapeDtypeStruct((n, cout, 2), jnp.float32)),
        grid=(n,),
        in_specs=[
            pl.BlockSpec((None, cin, ppad), lambda i: (i, 0, 0)),
            pl.BlockSpec((cout, 9 * cin), lambda i: (0, 0)),
            pl.BlockSpec((cin, 1), lambda i: (0, 0)),
            pl.BlockSpec((cin, 1), lambda i: (0, 0)),
            pl.BlockSpec((1, ppad), lambda i: (0, 0)),
            pl.BlockSpec((1, mp), lambda i: (0, 0)),
        ],
        out_specs=(pl.BlockSpec((None, cout, out_cols), lambda i: (i, 0, 0)),
                   pl.BlockSpec((None, cout, 2), lambda i: (i, 0, 0))),
        scratch_shapes=[pltpu.VMEM((cin, ppad), jnp.bfloat16),
                        pltpu.VMEM((9 * cin, mp), jnp.bfloat16)],
        compiler_params=pltpu.CompilerParams(
            dimension_semantics=("parallel",),
            vmem_limit_bytes=vmem_limit),
        cost_estimate=pl.CostEstimate(flops=flops, transcendentals=0,
                                      bytes_accessed=bytes_accessed),
    )(xp, w_cat, scale_in, shift_in, inter, valid)
    return y, stats


def _bn_relu_unpad_stage(y2, scale, shift, *, H, W):
    n, c, mp = y2.shape
    kernel = functools.partial(_bn_relu_unpad_kernel, H=H, W=W)
    return pl.pallas_call(
        kernel,
        out_shape=jax.ShapeDtypeStruct((n, c, H * W), jnp.float32),
        grid=(n,),
        in_specs=[pl.BlockSpec((None, c, mp), lambda i: (i, 0, 0)),
                  pl.BlockSpec((c, 1), lambda i: (0, 0)),
                  pl.BlockSpec((c, 1), lambda i: (0, 0))],
        out_specs=pl.BlockSpec((None, c, H * W), lambda i: (i, 0, 0)),
        compiler_params=pltpu.CompilerParams(dimension_semantics=("parallel",)),
    )(y2, scale, shift)


def _bn_scale_shift(stats, gamma, beta, count):
    """stats: [N, Cout, 2] per-image (sum, sum_sq) -> per-channel BN affine."""
    s = jnp.sum(stats[:, :, 0], axis=0)
    ss = jnp.sum(stats[:, :, 1], axis=0)
    mean = s / count
    var = jnp.maximum(ss / count - mean * mean, 0.0)
    scale = gamma * jax.lax.rsqrt(var + BN_EPS)
    shift = beta - mean * scale
    return (scale.reshape(-1, 1).astype(jnp.float32),
            shift.reshape(-1, 1).astype(jnp.float32))


@jax.jit
def conv_block_forward(x_nchw, params):
    """ConvBlock.forward: (conv3x3 -> BN(train) -> ReLU) x 2.  NCHW in/out."""
    n, cin, H, W = x_nchw.shape
    cout = params["w1"].shape[0]
    wp, hp = W + 2, H + 2
    pp = hp * wp
    ppad = pp + 2            # +2 so the largest tap slice stays in bounds
    mp = H * wp
    count = float(n * H * W)

    # Masks built once outside the kernels (no in-kernel integer div/mod).
    pos = jnp.arange(ppad)
    hh, ww = pos // wp, pos % wp
    inter = (((hh >= 1) & (hh <= H) & (ww >= 1) & (ww <= W) & (pos < pp))
             .astype(jnp.float32)[None, :])                        # [1, Ppad]
    posm = jnp.arange(mp)
    valid = ((posm % wp) < W).astype(jnp.float32)[None, :]         # [1, Mp]

    # Input -> bf16 padded-flat slab [N, Cin, Ppad].
    xp = jnp.pad(x_nchw, ((0, 0), (0, 0), (1, 1), (1, 1))).reshape(n, cin, pp)
    xp = jnp.pad(xp, ((0, 0), (0, 0), (0, ppad - pp))).astype(jnp.bfloat16)

    w1 = _fold_weight(params["w1"])
    w2 = _fold_weight(params["w2"])
    ones_in = jnp.ones((cin, 1), jnp.float32)
    zeros_in = jnp.zeros((cin, 1), jnp.float32)

    # Stage 1: conv1 + per-image stats; output kept as a bf16 padded slab so it
    # feeds conv2 directly (half the HBM traffic of the old f32 hand-off).
    y1, st1 = _conv_stage(xp, w1, ones_in, zeros_in, inter, valid,
                          H=H, W=W, apply_act=False, pack_padded=True,
                          out_dtype=jnp.bfloat16)
    scale1, shift1 = _bn_scale_shift(st1, params["gamma1"], params["beta1"], count)

    # Stage 2: (BN1 + ReLU1 fused in) + conv2 + per-image stats; compact layout
    # (no padded re-pack -- it only feeds the BN2 epilogue).
    y2, st2 = _conv_stage(y1, w2, scale1, shift1, inter, valid,
                          H=H, W=W, apply_act=True, pack_padded=False,
                          out_dtype=jnp.float32)
    scale2, shift2 = _bn_scale_shift(st2, params["gamma2"], params["beta2"], count)

    # Final BN2 + ReLU2 + un-pad fused epilogue -> [N, Cout, H*W] -> NCHW.
    out = _bn_relu_unpad_stage(y2, scale2, shift2, H=H, W=W)
    return out.reshape(n, cout, H, W)


# ------------------------- pure-JAX reference --------------------------------
def _reference_stage(x_nchw, w, gamma, beta):
    y = jax.lax.conv_general_dilated(
        x_nchw, w, window_strides=(1, 1), padding=((1, 1), (1, 1)),
        dimension_numbers=("NCHW", "OIHW", "NCHW"),
    )
    mean = jnp.mean(y, axis=(0, 2, 3), keepdims=True)
    var = jnp.mean((y - mean) ** 2, axis=(0, 2, 3), keepdims=True)
    y = (y - mean) * jax.lax.rsqrt(var + BN_EPS)
    y = y * gamma.reshape(1, -1, 1, 1) + beta.reshape(1, -1, 1, 1)
    return jnp.maximum(y, 0.0)


def conv_block_reference(x_nchw, params):
    x = _reference_stage(x_nchw, params["w1"], params["gamma1"], params["beta1"])
    x = _reference_stage(x, params["w2"], params["gamma2"], params["beta2"])
    return x


# --------------------------------- main ---------------------------------------
if __name__ == "__main__":
    N, IN_CH, OUT_CH, H, W = 2, 4, 8, 16, 16

    key = jax.random.PRNGKey(0)
    kx, kw1, kw2 = jax.random.split(key, 3)

    x = jax.random.normal(kx, (N, IN_CH, H, W), dtype=jnp.float32)

    # Conv weights ~ small random; BN gamma=1, beta=0 (PyTorch defaults).
    params = {
        "w1": 0.1 * jax.random.normal(kw1, (OUT_CH, IN_CH, 3, 3), jnp.float32),
        "gamma1": jnp.ones((OUT_CH,), jnp.float32),
        "beta1": jnp.zeros((OUT_CH,), jnp.float32),
        "w2": 0.1 * jax.random.normal(kw2, (OUT_CH, OUT_CH, 3, 3), jnp.float32),
        "gamma2": jnp.ones((OUT_CH,), jnp.float32),
        "beta2": jnp.zeros((OUT_CH,), jnp.float32),
    }

    out = jax.block_until_ready(conv_block_forward(x, params))
    ref = jax.block_until_ready(conv_block_reference(x, params))

    assert out.shape == (N, OUT_CH, H, W), out.shape
    # bf16 MXU operands / bf16 inter-stage tensor (f32 accumulation and BN stats)
    # vs. the pure-f32 reference: tolerance loosened accordingly.
    max_diff = float(jnp.max(jnp.abs(out - ref)))
    assert jnp.allclose(out, ref, atol=5e-2, rtol=5e-2), max_diff

    print("KERNEL_OK")
</pallas_src>

<mosaic_0001>
module attributes {stable_mosaic.version = 11 : i64} {
  func.func @_conv_stats_kernel(%arg0: i32, %arg1: memref<1x8x326xbf16, #tpu.memory_space<vmem>>, %arg2: memref<8x72xbf16, #tpu.memory_space<vmem>>, %arg3: memref<8x1xf32, #tpu.memory_space<vmem>>, %arg4: memref<8x1xf32, #tpu.memory_space<vmem>>, %arg5: memref<1x326xf32, #tpu.memory_space<vmem>>, %arg6: memref<1x288xf32, #tpu.memory_space<vmem>>, %arg7: memref<1x8x288xf32, #tpu.memory_space<vmem>>, %arg8: memref<1x8x2xf32, #tpu.memory_space<vmem>>, %arg9: memref<8x326xbf16, #tpu.memory_space<vmem>>, %arg10: memref<72x288xbf16, #tpu.memory_space<vmem>>) attributes {dimension_semantics = [#tpu.dimension_semantics<parallel>], iteration_bounds = array<i64: 2>, scalar_prefetch = 0 : i64, scratch_operands = 2 : i64, tpu.core_type = #tpu.core_type<tc>, window_params = [{transform_indices = @transform_0, window_bounds = array<i64: 1, 8, 326>}, {pipeline_mode = #tpu.pipeline_mode<synchronous>, transform_indices = @transform_1, window_bounds = array<i64: 8, 72>}, {pipeline_mode = #tpu.pipeline_mode<synchronous>, transform_indices = @transform_2, window_bounds = array<i64: 8, 1>}, {pipeline_mode = #tpu.pipeline_mode<synchronous>, transform_indices = @transform_3, window_bounds = array<i64: 8, 1>}, {pipeline_mode = #tpu.pipeline_mode<synchronous>, transform_indices = @transform_4, window_bounds = array<i64: 1, 326>}, {pipeline_mode = #tpu.pipeline_mode<synchronous>, transform_indices = @transform_5, window_bounds = array<i64: 1, 288>}, {transform_indices = @transform_6, window_bounds = array<i64: 1, 8, 288>}, {transform_indices = @transform_7, window_bounds = array<i64: 1, 8, 2>}]} {
    %c0 = arith.constant 0 : index
    %c0_0 = arith.constant 0 : index
    %c0_1 = arith.constant 0 : index
    %0 = vector.load %arg1[%c0, %c0_0, %c0_1] : memref<1x8x326xbf16, #tpu.memory_space<vmem>>, vector<1x8x326xbf16>
    %1 = vector.shape_cast %0 : vector<1x8x326xbf16> to vector<8x326xbf16>
    %2 = arith.extf %1 : vector<8x326xbf16> to vector<8x326xf32>
    %c0_2 = arith.constant 0 : index
    %c0_3 = arith.constant 0 : index
    %3 = vector.load %arg3[%c0_2, %c0_3] : memref<8x1xf32, #tpu.memory_space<vmem>>, vector<8x1xf32>
    %4 = vector.broadcast %3 : vector<8x1xf32> to vector<8x326xf32>
    %5 = arith.mulf %2, %4 : vector<8x326xf32>
    %c0_4 = arith.constant 0 : index
    %c0_5 = arith.constant 0 : index
    %6 = vector.load %arg4[%c0_4, %c0_5] : memref<8x1xf32, #tpu.memory_space<vmem>>, vector<8x1xf32>
    %7 = vector.broadcast %6 : vector<8x1xf32> to vector<8x326xf32>
    %8 = arith.addf %5, %7 : vector<8x326xf32>
    %cst = arith.constant 0.000000e+00 : f32
    %9 = vector.broadcast %cst : f32 to vector<8x326xf32>
    %10 = arith.maximumf %8, %9 : vector<8x326xf32>
    %c0_6 = arith.constant 0 : index
    %c0_7 = arith.constant 0 : index
    %11 = vector.load %arg5[%c0_6, %c0_7] : memref<1x326xf32, #tpu.memory_space<vmem>>, vector<1x326xf32>
    %12 = vector.broadcast %11 : vector<1x326xf32> to vector<8x326xf32>
    %13 = arith.mulf %10, %12 : vector<8x326xf32>
    %14 = arith.truncf %13 : vector<8x326xf32> to vector<8x326xbf16>
    %c0_8 = arith.constant 0 : index
    %c0_9 = arith.constant 0 : index
    %15 = vector.load %arg9[%c0_8, %c0_9] : memref<8x326xbf16, #tpu.memory_space<vmem>>, vector<8x326xbf16>
    tpu.vector_store %arg9[%c0_8, %c0_9], %14 {strides = array<i32>} : memref<8x326xbf16, #tpu.memory_space<vmem>>, vector<8x326xbf16>,
    %c0_10 = arith.constant 0 : index
    %c0_11 = arith.constant 0 : index
    %16 = vector.load %arg9[%c0_10, %c0_11] : memref<8x326xbf16, #tpu.memory_space<vmem>>, vector<8x288xbf16>
    %c0_12 = arith.constant 0 : index
    %c0_13 = arith.constant 0 : index
    %17 = vector.load %arg10[%c0_12, %c0_13] : memref<72x288xbf16, #tpu.memory_space<vmem>>, vector<8x288xbf16>
    tpu.vector_store %arg10[%c0_12, %c0_13], %16 {strides = array<i32>} : memref<72x288xbf16, #tpu.memory_space<vmem>>, vector<8x288xbf16>,
    %c0_14 = arith.constant 0 : index
    %c1 = arith.constant 1 : index
    %18 = vector.load %arg9[%c0_14, %c1] : memref<8x326xbf16, #tpu.memory_space<vmem>>, vector<8x288xbf16>
    %c8 = arith.constant 8 : index
    %c0_15 = arith.constant 0 : index
    %19 = vector.load %arg10[%c8, %c0_15] : memref<72x288xbf16, #tpu.memory_space<vmem>>, vector<8x288xbf16>
    tpu.vector_store %arg10[%c8, %c0_15], %18 {strides = array<i32>} : memref<72x288xbf16, #tpu.memory_space<vmem>>, vector<8x288xbf16>,
    %c0_16 = arith.constant 0 : index
    %c2 = arith.constant 2 : index
    %20 = vector.load %arg9[%c0_16, %c2] : memref<8x326xbf16, #tpu.memory_space<vmem>>, vector<8x288xbf16>
    %c16 = arith.constant 16 : index
    %c0_17 = arith.constant 0 : index
    %21 = vector.load %arg10[%c16, %c0_17] : memref<72x288xbf16, #tpu.memory_space<vmem>>, vector<8x288xbf16>
    tpu.vector_store %arg10[%c16, %c0_17], %20 {strides = array<i32>} : memref<72x288xbf16, #tpu.memory_space<vmem>>, vector<8x288xbf16>,
    %c0_18 = arith.constant 0 : index
    %c18 = arith.constant 18 : index
    %22 = vector.load %arg9[%c0_18, %c18] : memref<8x326xbf16, #tpu.memory_space<vmem>>, vector<8x288xbf16>
    %c24 = arith.constant 24 : index
    %c0_19 = arith.constant 0 : index
    %23 = vector.load %arg10[%c24, %c0_19] : memref<72x288xbf16, #tpu.memory_space<vmem>>, vector<8x288xbf16>
    tpu.vector_store %arg10[%c24, %c0_19], %22 {strides = array<i32>} : memref<72x288xbf16, #tpu.memory_space<vmem>>, vector<8x288xbf16>,
    %c0_20 = arith.constant 0 : index
    %c19 = arith.constant 19 : index
    %24 = vector.load %arg9[%c0_20, %c19] : memref<8x326xbf16, #tpu.memory_space<vmem>>, vector<8x288xbf16>
    %c32 = arith.constant 32 : index
    %c0_21 = arith.constant 0 : index
    %25 = vector.load %arg10[%c32, %c0_21] : memref<72x288xbf16, #tpu.memory_space<vmem>>, vector<8x288xbf16>
    tpu.vector_store %arg10[%c32, %c0_21], %24 {strides = array<i32>} : memref<72x288xbf16, #tpu.memory_space<vmem>>, vector<8x288xbf16>,
    %c0_22 = arith.constant 0 : index
    %c20 = arith.constant 20 : index
    %26 = vector.load %arg9[%c0_22, %c20] : memref<8x326xbf16, #tpu.memory_space<vmem>>, vector<8x288xbf16>
    %c40 = arith.constant 40 : index
    %c0_23 = arith.constant 0 : index
    %27 = vector.load %arg10[%c40, %c0_23] : memref<72x288xbf16, #tpu.memory_space<vmem>>, vector<8x288xbf16>
    tpu.vector_store %arg10[%c40, %c0_23], %26 {strides = array<i32>} : memref<72x288xbf16, #tpu.memory_space<vmem>>, vector<8x288xbf16>,
    %c0_24 = arith.constant 0 : index
    %c36 = arith.constant 36 : index
    %28 = vector.load %arg9[%c0_24, %c36] : memref<8x326xbf16, #tpu.memory_space<vmem>>, vector<8x288xbf16>
    %c48 = arith.constant 48 : index
    %c0_25 = arith.constant 0 : index
    %29 = vector.load %arg10[%c48, %c0_25] : memref<72x288xbf16, #tpu.memory_space<vmem>>, vector<8x288xbf16>
    tpu.vector_store %arg10[%c48, %c0_25], %28 {strides = array<i32>} : memref<72x288xbf16, #tpu.memory_space<vmem>>, vector<8x288xbf16>,
    %c0_26 = arith.constant 0 : index
    %c37 = arith.constant 37 : index
    %30 = vector.load %arg9[%c0_26, %c37] : memref<8x326xbf16, #tpu.memory_space<vmem>>, vector<8x288xbf16>
    %c56 = arith.constant 56 : index
    %c0_27 = arith.constant 0 : index
    %31 = vector.load %arg10[%c56, %c0_27] : memref<72x288xbf16, #tpu.memory_space<vmem>>, vector<8x288xbf16>
    tpu.vector_store %arg10[%c56, %c0_27], %30 {strides = array<i32>} : memref<72x288xbf16, #tpu.memory_space<vmem>>, vector<8x288xbf16>,
    %c0_28 = arith.constant 0 : index
    %c38 = arith.constant 38 : index
    %32 = vector.load %arg9[%c0_28, %c38] : memref<8x326xbf16, #tpu.memory_space<vmem>>, vector<8x288xbf16>
    %c64 = arith.constant 64 : index
    %c0_29 = arith.constant 0 : index
    %33 = vector.load %arg10[%c64, %c0_29] : memref<72x288xbf16, #tpu.memory_space<vmem>>, vector<8x288xbf16>
    tpu.vector_store %arg10[%c64, %c0_29], %32 {strides = array<i32>} : memref<72x288xbf16, #tpu.memory_space<vmem>>, vector<8x288xbf16>,
    %c0_30 = arith.constant 0 : index
    %c0_31 = arith.constant 0 : index
    %34 = vector.load %arg2[%c0_30, %c0_31] : memref<8x72xbf16, #tpu.memory_space<vmem>>, vector<8x72xbf16>
    %c0_32 = arith.constant 0 : index
    %c0_33 = arith.constant 0 : index
    %35 = vector.load %arg10[%c0_32, %c0_33] : memref<72x288xbf16, #tpu.memory_space<vmem>>, vector<72x288xbf16>
    %cst_34 = arith.constant dense<0.000000e+00> : vector<8x288xf32>
    %36 = tpu.matmul %34, %35, %cst_34 {dimension_numbers = #tpu.dot_dimension_numbers<[1], [0], [0], [1], [0, 0, 1, 1], [], []>} : vector<8x72xbf16>, vector<72x288xbf16>, vector<8x288xf32> -> vector<8x288xf32>
    %c0_35 = arith.constant 0 : index
    %c0_36 = arith.constant 0 : index
    %37 = vector.load %arg6[%c0_35, %c0_36] : memref<1x288xf32, #tpu.memory_space<vmem>>, vector<1x288xf32>
    %38 = vector.broadcast %37 : vector<1x288xf32> to vector<8x288xf32>
    %39 = arith.mulf %36, %38 : vector<8x288xf32>
    %cst_37 = arith.constant dense<0.000000e+00> : vector<8xf32>
    %40 = vector.multi_reduction <add>, %39, %cst_37 [1] : vector<8x288xf32> to vector<8xf32>
    %41 = vector.shape_cast %40 : vector<8xf32> to vector<8x1xf32>
    %42 = arith.mulf %39, %39 : vector<8x288xf32>
    %cst_38 = arith.constant dense<0.000000e+00> : vector<8xf32>
    %43 = vector.multi_reduction <add>, %42, %cst_38 [1] : vector<8x288xf32> to vector<8xf32>
    %44 = vector.shape_cast %43 : vector<8xf32> to vector<8x1xf32>
    %45 = tpu.concatenate %41, %44 in 1 : vector<8x1xf32>, vector<8x1xf32> -> vector<8x2xf32>
    %c0_39 = arith.constant 0 : index
    %c0_40 = arith.constant 0 : index
    %c0_41 = arith.constant 0 : index
    %46 = vector.load %arg8[%c0_39, %c0_40, %c0_41] : memref<1x8x2xf32, #tpu.memory_space<vmem>>, vector<1x8x2xf32>
    %47 = vector.shape_cast %46 : vector<1x8x2xf32> to vector<8x2xf32>
    %48 = vector.shape_cast %45 : vector<8x2xf32> to vector<1x8x2xf32>
    tpu.vector_store %arg8[%c0_39, %c0_40, %c0_41], %48 {strides = array<i32>} : memref<1x8x2xf32, #tpu.memory_space<vmem>>, vector<1x8x2xf32>,
    %c0_42 = arith.constant 0 : index
    %c0_43 = arith.constant 0 : index
    %c0_44 = arith.constant 0 : index
    %49 = vector.load %arg7[%c0_42, %c0_43, %c0_44] : memref<1x8x288xf32, #tpu.memory_space<vmem>>, vector<1x8x288xf32>
    %50 = vector.shape_cast %49 : vector<1x8x288xf32> to vector<8x288xf32>
    %51 = vector.shape_cast %39 : vector<8x288xf32> to vector<1x8x288xf32>
    tpu.vector_store %arg7[%c0_42, %c0_43, %c0_44], %51 {strides = array<i32>} : memref<1x8x288xf32, #tpu.memory_space<vmem>>, vector<1x8x288xf32>,
    return
  }
  func.func @transform_0(%arg0: i32) -> (i32, i32, i32) {
    %c0_i32 = arith.constant 0 : i32
    %c0_i32_0 = arith.constant 0 : i32
    %c0_i32_1 = arith.constant 0 : i32
    return %arg0, %c0_i32, %c0_i32_0 : i32, i32, i32
  }
  func.func @transform_1(%arg0: i32) -> (i32, i32) {
    %c0_i32 = arith.constant 0 : i32
    %c0_i32_0 = arith.constant 0 : i32
    %c0_i32_1 = arith.constant 0 : i32
    return %c0_i32, %c0_i32_0 : i32, i32
  }
  func.func @transform_2(%arg0: i32) -> (i32, i32) {
    %c0_i32 = arith.constant 0 : i32
    %c0_i32_0 = arith.constant 0 : i32
    %c0_i32_1 = arith.constant 0 : i32
    return %c0_i32, %c0_i32_0 : i32, i32
  }
  func.func @transform_3(%arg0: i32) -> (i32, i32) {
    %c0_i32 = arith.constant 0 : i32
    %c0_i32_0 = arith.constant 0 : i32
    %c0_i32_1 = arith.constant 0 : i32
    return %c0_i32, %c0_i32_0 : i32, i32
  }
  func.func @transform_4(%arg0: i32) -> (i32, i32) {
    %c0_i32 = arith.constant 0 : i32
    %c0_i32_0 = arith.constant 0 : i32
    %c0_i32_1 = arith.constant 0 : i32
    return %c0_i32, %c0_i32_0 : i32, i32
  }
  func.func @transform_5(%arg0: i32) -> (i32, i32) {
    %c0_i32 = arith.constant 0 : i32
    %c0_i32_0 = arith.constant 0 : i32
    %c0_i32_1 = arith.constant 0 : i32
    return %c0_i32, %c0_i32_0 : i32, i32
  }
  func.func @transform_6(%arg0: i32) -> (i32, i32, i32) {
    %c0_i32 = arith.constant 0 : i32
    %c0_i32_0 = arith.constant 0 : i32
    %c0_i32_1 = arith.constant 0 : i32
    return %arg0, %c0_i32, %c0_i32_0 : i32, i32, i32
  }
  func.func @transform_7(%arg0: i32) -> (i32, i32, i32) {
    %c0_i32 = arith.constant 0 : i32
    %c0_i32_0 = arith.constant 0 : i32
    %c0_i32_1 = arith.constant 0 : i32
    return %arg0, %c0_i32, %c0_i32_0 : i32, i32, i32
  }
}

module attributes {stable_mosaic.version = 11 : i64} {
  func.func @_conv_stats_kernel(%arg0: i32, %arg1: memref<1x4x326xbf16, #tpu.memory_space<vmem>>, %arg2: memref<8x36xbf16, #tpu.memory_space<vmem>>, %arg3: memref<4x1xf32, #tpu.memory_space<vmem>>, %arg4: memref<4x1xf32, #tpu.memory_space<vmem>>, %arg5: memref<1x326xf32, #tpu.memory_space<vmem>>, %arg6: memref<1x288xf32, #tpu.memory_space<vmem>>, %arg7: memref<1x8x326xbf16, #tpu.memory_space<vmem>>, %arg8: memref<1x8x2xf32, #tpu.memory_space<vmem>>, %arg9: memref<4x326xbf16, #tpu.memory_space<vmem>>, %arg10: memref<36x288xbf16, #tpu.memory_space<vmem>>) attributes {dimension_semantics = [#tpu.dimension_semantics<parallel>], iteration_bounds = array<i64: 2>, scalar_prefetch = 0 : i64, scratch_operands = 2 : i64, tpu.core_type = #tpu.core_type<tc>, window_params = [{transform_indices = @transform_0, window_bounds = array<i64: 1, 4, 326>}, {pipeline_mode = #tpu.pipeline_mode<synchronous>, transform_indices = @transform_1, window_bounds = array<i64: 8, 36>}, {pipeline_mode = #tpu.pipeline_mode<synchronous>, transform_indices = @transform_2, window_bounds = array<i64: 4, 1>}, {pipeline_mode = #tpu.pipeline_mode<synchronous>, transform_indices = @transform_3, window_bounds = array<i64: 4, 1>}, {pipeline_mode = #tpu.pipeline_mode<synchronous>, transform_indices = @transform_4, window_bounds = array<i64: 1, 326>}, {pipeline_mode = #tpu.pipeline_mode<synchronous>, transform_indices = @transform_5, window_bounds = array<i64: 1, 288>}, {transform_indices = @transform_6, window_bounds = array<i64: 1, 8, 326>}, {transform_indices = @transform_7, window_bounds = array<i64: 1, 8, 2>}]} {
    %c0 = arith.constant 0 : index
    %c0_0 = arith.constant 0 : index
    %c0_1 = arith.constant 0 : index
    %0 = vector.load %arg1[%c0, %c0_0, %c0_1] : memref<1x4x326xbf16, #tpu.memory_space<vmem>>, vector<1x4x288xbf16>
    %1 = vector.shape_cast %0 : vector<1x4x288xbf16> to vector<4x288xbf16>
    %c0_2 = arith.constant 0 : index
    %c0_3 = arith.constant 0 : index
    %2 = vector.load %arg10[%c0_2, %c0_3] : memref<36x288xbf16, #tpu.memory_space<vmem>>, vector<4x288xbf16>
    tpu.vector_store %arg10[%c0_2, %c0_3], %1 {strides = array<i32>} : memref<36x288xbf16, #tpu.memory_space<vmem>>, vector<4x288xbf16>,
    %c0_4 = arith.constant 0 : index
    %c0_5 = arith.constant 0 : index
    %c1 = arith.constant 1 : index
    %3 = vector.load %arg1[%c0_4, %c0_5, %c1] : memref<1x4x326xbf16, #tpu.memory_space<vmem>>, vector<1x4x288xbf16>
    %4 = vector.shape_cast %3 : vector<1x4x288xbf16> to vector<4x288xbf16>
    %c4 = arith.constant 4 : index
    %c0_6 = arith.constant 0 : index
    %5 = vector.load %arg10[%c4, %c0_6] : memref<36x288xbf16, #tpu.memory_space<vmem>>, vector<4x288xbf16>
    tpu.vector_store %arg10[%c4, %c0_6], %4 {strides = array<i32>} : memref<36x288xbf16, #tpu.memory_space<vmem>>, vector<4x288xbf16>,
    %c0_7 = arith.constant 0 : index
    %c0_8 = arith.constant 0 : index
    %c2 = arith.constant 2 : index
    %6 = vector.load %arg1[%c0_7, %c0_8, %c2] : memref<1x4x326xbf16, #tpu.memory_space<vmem>>, vector<1x4x288xbf16>
    %7 = vector.shape_cast %6 : vector<1x4x288xbf16> to vector<4x288xbf16>
    %c8 = arith.constant 8 : index
    %c0_9 = arith.constant 0 : index
    %8 = vector.load %arg10[%c8, %c0_9] : memref<36x288xbf16, #tpu.memory_space<vmem>>, vector<4x288xbf16>
    tpu.vector_store %arg10[%c8, %c0_9], %7 {strides = array<i32>} : memref<36x288xbf16, #tpu.memory_space<vmem>>, vector<4x288xbf16>,
    %c0_10 = arith.constant 0 : index
    %c0_11 = arith.constant 0 : index
    %c18 = arith.constant 18 : index
    %9 = vector.load %arg1[%c0_10, %c0_11, %c18] : memref<1x4x326xbf16, #tpu.memory_space<vmem>>, vector<1x4x288xbf16>
    %10 = vector.shape_cast %9 : vector<1x4x288xbf16> to vector<4x288xbf16>
    %c12 = arith.constant 12 : index
    %c0_12 = arith.constant 0 : index
    %11 = vector.load %arg10[%c12, %c0_12] : memref<36x288xbf16, #tpu.memory_space<vmem>>, vector<4x288xbf16>
    tpu.vector_store %arg10[%c12, %c0_12], %10 {strides = array<i32>} : memref<36x288xbf16, #tpu.memory_space<vmem>>, vector<4x288xbf16>,
    %c0_13 = arith.constant 0 : index
    %c0_14 = arith.constant 0 : index
    %c19 = arith.constant 19 : index
    %12 = vector.load %arg1[%c0_13, %c0_14, %c19] : memref<1x4x326xbf16, #tpu.memory_space<vmem>>, vector<1x4x288xbf16>
    %13 = vector.shape_cast %12 : vector<1x4x288xbf16> to vector<4x288xbf16>
    %c16 = arith.constant 16 : index
    %c0_15 = arith.constant 0 : index
    %14 = vector.load %arg10[%c16, %c0_15] : memref<36x288xbf16, #tpu.memory_space<vmem>>, vector<4x288xbf16>
    tpu.vector_store %arg10[%c16, %c0_15], %13 {strides = array<i32>} : memref<36x288xbf16, #tpu.memory_space<vmem>>, vector<4x288xbf16>,
    %c0_16 = arith.constant 0 : index
    %c0_17 = arith.constant 0 : index
    %c20 = arith.constant 20 : index
    %15 = vector.load %arg1[%c0_16, %c0_17, %c20] : memref<1x4x326xbf16, #tpu.memory_space<vmem>>, vector<1x4x288xbf16>
    %16 = vector.shape_cast %15 : vector<1x4x288xbf16> to vector<4x288xbf16>
    %c20_18 = arith.constant 20 : index
    %c0_19 = arith.constant 0 : index
    %17 = vector.load %arg10[%c20_18, %c0_19] : memref<36x288xbf16, #tpu.memory_space<vmem>>, vector<4x288xbf16>
    tpu.vector_store %arg10[%c20_18, %c0_19], %16 {strides = array<i32>} : memref<36x288xbf16, #tpu.memory_space<vmem>>, vector<4x288xbf16>,
    %c0_20 = arith.constant 0 : index
    %c0_21 = arith.constant 0 : index
    %c36 = arith.constant 36 : index
    %18 = vector.load %arg1[%c0_20, %c0_21, %c36] : memref<1x4x326xbf16, #tpu.memory_space<vmem>>, vector<1x4x288xbf16>
    %19 = vector.shape_cast %18 : vector<1x4x288xbf16> to vector<4x288xbf16>
    %c24 = arith.constant 24 : index
    %c0_22 = arith.constant 0 : index
    %20 = vector.load %arg10[%c24, %c0_22] : memref<36x288xbf16, #tpu.memory_space<vmem>>, vector<4x288xbf16>
    tpu.vector_store %arg10[%c24, %c0_22], %19 {strides = array<i32>} : memref<36x288xbf16, #tpu.memory_space<vmem>>, vector<4x288xbf16>,
    %c0_23 = arith.constant 0 : index
    %c0_24 = arith.constant 0 : index
    %c37 = arith.constant 37 : index
    %21 = vector.load %arg1[%c0_23, %c0_24, %c37] : memref<1x4x326xbf16, #tpu.memory_space<vmem>>, vector<1x4x288xbf16>
    %22 = vector.shape_cast %21 : vector<1x4x288xbf16> to vector<4x288xbf16>
    %c28 = arith.constant 28 : index
    %c0_25 = arith.constant 0 : index
    %23 = vector.load %arg10[%c28, %c0_25] : memref<36x288xbf16, #tpu.memory_space<vmem>>, vector<4x288xbf16>
    tpu.vector_store %arg10[%c28, %c0_25], %22 {strides = array<i32>} : memref<36x288xbf16, #tpu.memory_space<vmem>>, vector<4x288xbf16>,
    %c0_26 = arith.constant 0 : index
    %c0_27 = arith.constant 0 : index
    %c38 = arith.constant 38 : index
    %24 = vector.load %arg1[%c0_26, %c0_27, %c38] : memref<1x4x326xbf16, #tpu.memory_space<vmem>>, vector<1x4x288xbf16>
    %25 = vector.shape_cast %24 : vector<1x4x288xbf16> to vector<4x288xbf16>
    %c32 = arith.constant 32 : index
    %c0_28 = arith.constant 0 : index
    %26 = vector.load %arg10[%c32, %c0_28] : memref<36x288xbf16, #tpu.memory_space<vmem>>, vector<4x288xbf16>
    tpu.vector_store %arg10[%c32, %c0_28], %25 {strides = array<i32>} : memref<36x288xbf16, #tpu.memory_space<vmem>>, vector<4x288xbf16>,
    %c0_29 = arith.constant 0 : index
    %c0_30 = arith.constant 0 : index
    %27 = vector.load %arg2[%c0_29, %c0_30] : memref<8x36xbf16, #tpu.memory_space<vmem>>, vector<8x36xbf16>
    %c0_31 = arith.constant 0 : index
    %c0_32 = arith.constant 0 : index
    %28 = vector.load %arg10[%c0_31, %c0_32] : memref<36x288xbf16, #tpu.memory_space<vmem>>, vector<36x288xbf16>
    %cst = arith.constant dense<0.000000e+00> : vector<8x288xf32>
    %29 = tpu.matmul %27, %28, %cst {dimension_numbers = #tpu.dot_dimension_numbers<[1], [0], [0], [1], [0, 0, 1, 1], [], []>} : vector<8x36xbf16>, vector<36x288xbf16>, vector<8x288xf32> -> vector<8x288xf32>
    %c0_33 = arith.constant 0 : index
    %c0_34 = arith.constant 0 : index
    %30 = vector.load %arg6[%c0_33, %c0_34] : memref<1x288xf32, #tpu.memory_space<vmem>>, vector<1x288xf32>
    %31 = vector.broadcast %30 : vector<1x288xf32> to vector<8x288xf32>
    %32 = arith.mulf %29, %31 : vector<8x288xf32>
    %cst_35 = arith.constant dense<0.000000e+00> : vector<8xf32>
    %33 = vector.multi_reduction <add>, %32, %cst_35 [1] : vector<8x288xf32> to vector<8xf32>
    %34 = vector.shape_cast %33 : vector<8xf32> to vector<8x1xf32>
    %35 = arith.mulf %32, %32 : vector<8x288xf32>
    %cst_36 = arith.constant dense<0.000000e+00> : vector<8xf32>
    %36 = vector.multi_reduction <add>, %35, %cst_36 [1] : vector<8x288xf32> to vector<8xf32>
    %37 = vector.shape_cast %36 : vector<8xf32> to vector<8x1xf32>
    %38 = tpu.concatenate %34, %37 in 1 : vector<8x1xf32>, vector<8x1xf32> -> vector<8x2xf32>
    %c0_37 = arith.constant 0 : index
    %c0_38 = arith.constant 0 : index
    %c0_39 = arith.constant 0 : index
    %39 = vector.load %arg8[%c0_37, %c0_38, %c0_39] : memref<1x8x2xf32, #tpu.memory_space<vmem>>, vector<1x8x2xf32>
    %40 = vector.shape_cast %39 : vector<1x8x2xf32> to vector<8x2xf32>
    %41 = vector.shape_cast %38 : vector<8x2xf32> to vector<1x8x2xf32>
    tpu.vector_store %arg8[%c0_37, %c0_38, %c0_39], %41 {strides = array<i32>} : memref<1x8x2xf32, #tpu.memory_space<vmem>>, vector<1x8x2xf32>,
    %cst_40 = arith.constant 0.000000e+00 : bf16
    %42 = vector.broadcast %cst_40 : bf16 to vector<8x19xbf16>
    %c0_41 = arith.constant 0 : index
    %c0_42 = arith.constant 0 : index
    %c0_43 = arith.constant 0 : index
    %43 = vector.load %arg7[%c0_41, %c0_42, %c0_43] : memref<1x8x326xbf16, #tpu.memory_space<vmem>>, vector<1x8x19xbf16>
    %44 = vector.shape_cast %43 : vector<1x8x19xbf16> to vector<8x19xbf16>
    %45 = vector.shape_cast %42 : vector<8x19xbf16> to vector<1x8x19xbf16>
    tpu.vector_store %arg7[%c0_41, %c0_42, %c0_43], %45 {strides = array<i32>} : memref<1x8x326xbf16, #tpu.memory_space<vmem>>, vector<1x8x19xbf16>,
    %46 = arith.truncf %32 : vector<8x288xf32> to vector<8x288xbf16>
    %c0_44 = arith.constant 0 : index
    %c0_45 = arith.constant 0 : index
    %c19_46 = arith.constant 19 : index
    %47 = vector.load %arg7[%c0_44, %c0_45, %c19_46] : memref<1x8x326xbf16, #tpu.memory_space<vmem>>, vector<1x8x288xbf16>
    %48 = vector.shape_cast %47 : vector<1x8x288xbf16> to vector<8x288xbf16>
    %49 = vector.shape_cast %46 : vector<8x288xbf16> to vector<1x8x288xbf16>
    tpu.vector_store %arg7[%c0_44, %c0_45, %c19_46], %49 {strides = array<i32>} : memref<1x8x326xbf16, #tpu.memory_space<vmem>>, vector<1x8x288xbf16>,
    %cst_47 = arith.constant 0.000000e+00 : bf16
    %50 = vector.broadcast %cst_47 : bf16 to vector<8x19xbf16>
    %c0_48 = arith.constant 0 : index
    %c0_49 = arith.constant 0 : index
    %c307 = arith.constant 307 : index
    %51 = vector.load %arg7[%c0_48, %c0_49, %c307] : memref<1x8x326xbf16, #tpu.memory_space<vmem>>, vector<1x8x19xbf16>
    %52 = vector.shape_cast %51 : vector<1x8x19xbf16> to vector<8x19xbf16>
    %53 = vector.shape_cast %50 : vector<8x19xbf16> to vector<1x8x19xbf16>
    tpu.vector_store %arg7[%c0_48, %c0_49, %c307], %53 {strides = array<i32>} : memref<1x8x326xbf16, #tpu.memory_space<vmem>>, vector<1x8x19xbf16>,
    return
  }
  func.func @transform_0(%arg0: i32) -> (i32, i32, i32) {
    %c0_i32 = arith.constant 0 : i32
    %c0_i32_0 = arith.constant 0 : i32
    %c0_i32_1 = arith.constant 0 : i32
    return %arg0, %c0_i32, %c0_i32_0 : i32, i32, i32
  }
  func.func @transform_1(%arg0: i32) -> (i32, i32) {
    %c0_i32 = arith.constant 0 : i32
    %c0_i32_0 = arith.constant 0 : i32
    %c0_i32_1 = arith.constant 0 : i32
    return %c0_i32, %c0_i32_0 : i32, i32
  }
  func.func @transform_2(%arg0: i32) -> (i32, i32) {
    %c0_i32 = arith.constant 0 : i32
    %c0_i32_0 = arith.constant 0 : i32
    %c0_i32_1 = arith.constant 0 : i32
    return %c0_i32, %c0_i32_0 : i32, i32
  }
  func.func @transform_3(%arg0: i32) -> (i32, i32) {
    %c0_i32 = arith.constant 0 : i32
    %c0_i32_0 = arith.constant 0 : i32
    %c0_i32_1 = arith.constant 0 : i32
    return %c0_i32, %c0_i32_0 : i32, i32
  }
  func.func @transform_4(%arg0: i32) -> (i32, i32) {
    %c0_i32 = arith.constant 0 : i32
    %c0_i32_0 = arith.constant 0 : i32
    %c0_i32_1 = arith.constant 0 : i32
    return %c0_i32, %c0_i32_0 : i32, i32
  }
  func.func @transform_5(%arg0: i32) -> (i32, i32) {
    %c0_i32 = arith.constant 0 : i32
    %c0_i32_0 = arith.constant 0 : i32
    %c0_i32_1 = arith.constant 0 : i32
    return %c0_i32, %c0_i32_0 : i32, i32
  }
  func.func @transform_6(%arg0: i32) -> (i32, i32, i32) {
    %c0_i32 = arith.constant 0 : i32
    %c0_i32_0 = arith.constant 0 : i32
    %c0_i32_1 = arith.constant 0 : i32
    return %arg0, %c0_i32, %c0_i32_0 : i32, i32, i32
  }
  func.func @transform_7(%arg0: i32) -> (i32, i32, i32) {
    %c0_i32 = arith.constant 0 : i32
    %c0_i32_0 = arith.constant 0 : i32
    %c0_i32_1 = arith.constant 0 : i32
    return %arg0, %c0_i32, %c0_i32_0 : i32, i32, i32
  }
}

module attributes {stable_mosaic.version = 11 : i64} {
  func.func @_bn_relu_unpad_kernel(%arg0: i32, %arg1: memref<1x8x288xf32, #tpu.memory_space<vmem>>, %arg2: memref<8x1xf32, #tpu.memory_space<vmem>>, %arg3: memref<8x1xf32, #tpu.memory_space<vmem>>, %arg4: memref<1x8x256xf32, #tpu.memory_space<vmem>>) attributes {dimension_semantics = [#tpu.dimension_semantics<parallel>], iteration_bounds = array<i64: 2>, scalar_prefetch = 0 : i64, scratch_operands = 0 : i64, tpu.core_type = #tpu.core_type<tc>, window_params = [{transform_indices = @transform_0, window_bounds = array<i64: 1, 8, 288>}, {pipeline_mode = #tpu.pipeline_mode<synchronous>, transform_indices = @transform_1, window_bounds = array<i64: 8, 1>}, {pipeline_mode = #tpu.pipeline_mode<synchronous>, transform_indices = @transform_2, window_bounds = array<i64: 8, 1>}, {transform_indices = @transform_3, window_bounds = array<i64: 1, 8, 256>}]} {
    %c0 = arith.constant 0 : index
    %c0_0 = arith.constant 0 : index
    %c0_1 = arith.constant 0 : index
    %0 = vector.load %arg1[%c0, %c0_0, %c0_1] : memref<1x8x288xf32, #tpu.memory_space<vmem>>, vector<1x8x288xf32>
    %1 = vector.shape_cast %0 : vector<1x8x288xf32> to vector<8x288xf32>
    %c0_2 = arith.constant 0 : index
    %c0_3 = arith.constant 0 : index
    %2 = vector.load %arg2[%c0_2, %c0_3] : memref<8x1xf32, #tpu.memory_space<vmem>>, vector<8x1xf32>
    %3 = vector.broadcast %2 : vector<8x1xf32> to vector<8x288xf32>
    %4 = arith.mulf %1, %3 : vector<8x288xf32>
    %c0_4 = arith.constant 0 : index
    %c0_5 = arith.constant 0 : index
    %5 = vector.load %arg3[%c0_4, %c0_5] : memref<8x1xf32, #tpu.memory_space<vmem>>, vector<8x1xf32>
    %6 = vector.broadcast %5 : vector<8x1xf32> to vector<8x288xf32>
    %7 = arith.addf %4, %6 : vector<8x288xf32>
    %cst = arith.constant 0.000000e+00 : f32
    %8 = vector.broadcast %cst : f32 to vector<8x288xf32>
    %9 = arith.maximumf %7, %8 : vector<8x288xf32>
    %10 = vector.extract_strided_slice %9 {offsets = [0, 0], sizes = [8, 16], strides = [1, 1]} : vector<8x288xf32> to vector<8x16xf32>
    %11 = vector.extract_strided_slice %9 {offsets = [0, 18], sizes = [8, 16], strides = [1, 1]} : vector<8x288xf32> to vector<8x16xf32>
    %12 = vector.extract_strided_slice %9 {offsets = [0, 36], sizes = [8, 16], strides = [1, 1]} : vector<8x288xf32> to vector<8x16xf32>
    %13 = vector.extract_strided_slice %9 {offsets = [0, 54], sizes = [8, 16], strides = [1, 1]} : vector<8x288xf32> to vector<8x16xf32>
    %14 = vector.extract_strided_slice %9 {offsets = [0, 72], sizes = [8, 16], strides = [1, 1]} : vector<8x288xf32> to vector<8x16xf32>
    %15 = vector.extract_strided_slice %9 {offsets = [0, 90], sizes = [8, 16], strides = [1, 1]} : vector<8x288xf32> to vector<8x16xf32>
    %16 = vector.extract_strided_slice %9 {offsets = [0, 108], sizes = [8, 16], strides = [1, 1]} : vector<8x288xf32> to vector<8x16xf32>
    %17 = vector.extract_strided_slice %9 {offsets = [0, 126], sizes = [8, 16], strides = [1, 1]} : vector<8x288xf32> to vector<8x16xf32>
    %18 = vector.extract_strided_slice %9 {offsets = [0, 144], sizes = [8, 16], strides = [1, 1]} : vector<8x288xf32> to vector<8x16xf32>
    %19 = vector.extract_strided_slice %9 {offsets = [0, 162], sizes = [8, 16], strides = [1, 1]} : vector<8x288xf32> to vector<8x16xf32>
    %20 = vector.extract_strided_slice %9 {offsets = [0, 180], sizes = [8, 16], strides = [1, 1]} : vector<8x288xf32> to vector<8x16xf32>
    %21 = vector.extract_strided_slice %9 {offsets = [0, 198], sizes = [8, 16], strides = [1, 1]} : vector<8x288xf32> to vector<8x16xf32>
    %22 = vector.extract_strided_slice %9 {offsets = [0, 216], sizes = [8, 16], strides = [1, 1]} : vector<8x288xf32> to vector<8x16xf32>
    %23 = vector.extract_strided_slice %9 {offsets = [0, 234], sizes = [8, 16], strides = [1, 1]} : vector<8x288xf32> to vector<8x16xf32>
    %24 = vector.extract_strided_slice %9 {offsets = [0, 252], sizes = [8, 16], strides = [1, 1]} : vector<8x288xf32> to vector<8x16xf32>
    %25 = vector.extract_strided_slice %9 {offsets = [0, 270], sizes = [8, 16], strides = [1, 1]} : vector<8x288xf32> to vector<8x16xf32>
    %26 = tpu.concatenate %10, %11, %12, %13, %14, %15, %16, %17, %18, %19, %20, %21, %22, %23, %24, %25 in 1 : vector<8x16xf32>, vector<8x16xf32>, vector<8x16xf32>, vector<8x16xf32>, vector<8x16xf32>, vector<8x16xf32>, vector<8x16xf32>, vector<8x16xf32>, vector<8x16xf32>, vector<8x16xf32>, vector<8x16xf32>, vector<8x16xf32>, vector<8x16xf32>, vector<8x16xf32>, vector<8x16xf32>, vector<8x16xf32> -> vector<8x256xf32>
    %c0_6 = arith.constant 0 : index
    %c0_7 = arith.constant 0 : index
    %c0_8 = arith.constant 0 : index
    %27 = vector.load %arg4[%c0_6, %c0_7, %c0_8] : memref<1x8x256xf32, #tpu.memory_space<vmem>>, vector<1x8x256xf32>
    %28 = vector.shape_cast %27 : vector<1x8x256xf32> to vector<8x256xf32>
    %29 = vector.shape_cast %26 : vector<8x256xf32> to vector<1x8x256xf32>
    tpu.vector_store %arg4[%c0_6, %c0_7, %c0_8], %29 {strides = array<i32>} : memref<1x8x256xf32, #tpu.memory_space<vmem>>, vector<1x8x256xf32>,
    return
  }
  func.func @transform_0(%arg0: i32) -> (i32, i32, i32) {
    %c0_i32 = arith.constant 0 : i32
    %c0_i32_0 = arith.constant 0 : i32
    %c0_i32_1 = arith.constant 0 : i32
    return %arg0, %c0_i32, %c0_i32_0 : i32, i32, i32
  }
  func.func @transform_1(%arg0: i32) -> (i32, i32) {
    %c0_i32 = arith.constant 0 : i32
    %c0_i32_0 = arith.constant 0 : i32
    %c0_i32_1 = arith.constant 0 : i32
    return %c0_i32, %c0_i32_0 : i32, i32
  }
  func.func @transform_2(%arg0: i32) -> (i32, i32) {
    %c0_i32 = arith.constant 0 : i32
    %c0_i32_0 = arith.constant 0 : i32
    %c0_i32_1 = arith.constant 0 : i32
    return %c0_i32, %c0_i32_0 : i32, i32
  }
  func.func @transform_3(%arg0: i32) -> (i32, i32, i32) {
    %c0_i32 = arith.constant 0 : i32
    %c0_i32_0 = arith.constant 0 : i32
    %c0_i32_1 = arith.constant 0 : i32
    return %arg0, %c0_i32, %c0_i32_0 : i32, i32, i32
  }
}

</mosaic_0001>

<bundles_post_ra>
// kernel: conv_block_forward.5
= control target key start
LH: loop header
LB: loop body
LE: loop exit
PB: predicated region body
PF: predicated region fallthrough
CT: control target
= control target key end

     0   :  { %s410_s12 = smov 0   ;;  %s461_s0 = inlined_call_operand.vmem [shape: f32[2,8,288], index: 0, kind: input, shape index: {}]   ;;  %s462_s1 = inlined_call_operand.vmem [shape: f32[8,1], index: 1, kind: input, shape index: {}]   ;;  %s463_s2 = inlined_call_operand.vmem [shape: f32[8,1], index: 2, kind: input, shape index: {}]   ;;  %s464_s3 = inlined_call_operand.vmem [shape: f32[2,8,256], index: 3, kind: output, shape index: {}]  }
   0x1 LB: > { %s329_s13 = sadd.s32 4294967295, %s372_s12   ;;  %p333_p0 = scmp.ge.s32.totalorder %s372_s12, 1  ;;  %s372_s12 = sphi %s410_s12, %s13_s12  }
   0x2   : > { %p137_p1 = scmp.lt.s32.totalorder %s372_s12, 3 }
   0x4   : > { %p138_p2 = pnand %p333_p0, %p137_p1 }
   0x5   : > { %v174_v0 = vld [vmem:[%s462_s1] sm:$0xff] (!%p138_p2)  ;;  %v374_v1 = vmov (!%p138_p2), 0   ;;  %p161_p3 = scmp.lt.s32.totalorder (!%p138_p2), %s329_s13, 1  ;;  %s375_s22 = smov (!%p138_p2), 110   ;;  %vm251_vm0 = vcmask (!%p138_p2), 130048   ;;  %vm253_vm1 = vcmask (!%p138_p2), 261120  }
   0x6   : > { %141 = sbr.rel (%p138_p2) target bundleno = 293 (0x125), region = 32  ;;  %365 = vset.pattern.permute.xlu0 (!%p138_p2), %v374_v1  ;;  %v183_v2 = vld [vmem:[%s463_s2] sm:$0xff] (!%p138_p2)  ;;  %s376_s23 = smov (!%p138_p2), 126   ;;  %vm255_vm2 = vcmask (!%p138_p2), 392192   ;;  %vm245_vm3 = vcmask (!%p138_p2), 818176   ;;  %vm257_vm4 = vcmask (!%p138_p2), 523264  }
   0x7   : > { %177 = vperm.xlu0 (!%p138_p2), %365, %v174_v0   ;;  %s377_s24 = smov (!%p138_p2), 108   ;;  %s378_s25 = smov (!%p138_p2), 112   ;;  %vm259_vm5 = vcmask (!%p138_p2), 654336   ;;  %vm261_vm6 = vcmask (!%p138_p2), 785408   ;;  %vm263_vm7 = vcmask (!%p138_p2), 916480   ;;  %vm219_vm8 = vcmask (!%p138_p2), 932864  }
   0x8   : > { %s379_s26 = smov (!%p138_p2), 106   ;;  %s380_s27 = smov (!%p138_p2), 124  }
   0x9   : > { %s381_s28 = smov (!%p138_p2), 104   ;;  %s382_s29 = smov (!%p138_p2), 122  }
   0xa   : > { %s383_s30 = smov (!%p138_p2), 102   ;;  %s384_s4 = smov (!%p138_p2), 120  }
   0xb   : > { %186 = vperm.xlu0 (!%p138_p2), %365, %v183_v2   ;;  %s385_s5 = smov (!%p138_p2), 100   ;;  %s386_s6 = smov (!%p138_p2), 118  }
   0xc   : > { %s387_s7 = smov (!%p138_p2), 114   ;;  %s388_s8 = smov (!%p138_p2), 98  }
   0xd   : > { %s466_s13 = smov (!%p161_p3, %s329_s13), 1  ;;  %s389_s9 = smov 116  }
   0xe   : > { %s340_s18 = smul.u32 24, %s466_s13  ;;  %s339_s10 = sshll.u32 %s466_s13, 4 }
   0xf   : > { %s170_s15 = scalar_lea.vmem %s464_s3, %s339_s10 }
  0x10   : > { %s165_s21 = scalar_lea.vmem %s461_s0, %s340_s18 }
  0x11   : > { %v171_v4 = vld [vmem:[%s165_s21] sm:$0xff]  ;;  %v172_v5 = vld [vmem:[%s165_s21 + $0x8] sm:$0xff]  ;;  %v173_v13 = vld [vmem:[%s165_s21 + $0x10] sm:$0xff] }
  0x86   : > { %v178_v3 = vpop.permute.xlu0 %177 }
  0x87   : > { %v180_v6 = vmul.f32 %v178_v3, %v171_v4  ;;  %v181_v7 = vmul.f32 %v178_v3, %v172_v5  ;;  %v182_v14 = vmul.f32 %v178_v3, %v173_v13 }
  0x8a   : > { %v187_v8 = vpop.permute.xlu0 %186 }
  0x8b   : > { %v189_v9 = vadd.f32 %v187_v8, %v180_v6  ;;  %v190_v10 = vadd.f32 %v187_v8, %v181_v7  ;;  %v191_v15 = vadd.f32 %v187_v8, %v182_v14 }
  0x8d   : > { %v430_v11 = vmax.f32 %v189_v9, 0.0  ;;  %v193_v12 = vmax.f32 %v190_v10, 0.0  ;;  %v194_v16 = vmax.f32 %v191_v15, 0.0 }
  0x8f   : > { %225 = vrot.lane.b32.xlu0 %v193_v12, %s375_s22  ;;  %196 = vrot.lane.b32.xlu1 %v430_v11, %s376_s23 }
  0x93   : > { %228 = vrot.lane.b32.xlu0 %v193_v12, %s377_s24  ;;  %222 = vrot.lane.b32.xlu1 %v193_v12, %s378_s25 }
  0x97   : > { %231 = vrot.lane.b32.xlu0 %v193_v12, %s379_s26  ;;  %199 = vrot.lane.b32.xlu1 %v430_v11, %s380_s27 }
  0x9b   : > { %234 = vrot.lane.b32.xlu0 %v193_v12, %s381_s28  ;;  %202 = vrot.lane.b32.xlu1 %v430_v11, %s382_s29 }
  0x9f   : > { %237 = vrot.lane.b32.xlu0 %v193_v12, %s383_s30  ;;  %205 = vrot.lane.b32.xlu1 %v430_v11, %s384_s4 }
  0xa3   : > { %243 = vrot.lane.b32.xlu0 %v194_v16, %s385_s5  ;;  %208 = vrot.lane.b32.xlu1 %v430_v11, %s386_s6 }
  0xa7   : > { %215 = vrot.lane.b32.xlu0 %v430_v11, %s387_s7  ;;  %241 = vrot.lane.b32.xlu1 %v193_v12, %s385_s5 }
  0xab   : > { %248 = vrot.lane.b32.xlu0 %v194_v16, %s388_s8  ;;  %211 = vrot.lane.b32.xlu1 %v430_v11, %s389_s9 }
  0xaf   : > { %217 = vrot.lane.b32.xlu1 %v193_v12, %s387_s7 }
 0x101   : > { %v226_v17 = vpop.permute.xlu0 %225  ;;  %v197_v18 = vpop.permute.xlu1 %196 }
 0x102   : > { %v252_v37 = vsel %vm251_vm0, %v430_v11, %v197_v18 }
 0x105   : > { %v229_v19 = vpop.permute.xlu0 %228  ;;  %v223_v20 = vpop.permute.xlu1 %222 }
 0x106   : > { %v265_v29 = vsel %vm251_vm0, %v223_v20, %v226_v17 }
 0x107   : > { %v266_v30 = vsel %vm253_vm1, %v265_v29, %v229_v19 }
 0x109   : > { %v232_v21 = vpop.permute.xlu0 %231  ;;  %v200_v22 = vpop.permute.xlu1 %199 }
 0x10a   : > { %v267_v33 = vsel %vm255_vm2, %v266_v30, %v232_v21  ;;  %v254_v41 = vsel %vm253_vm1, %v252_v37, %v200_v22 }
 0x10d   : > { %v235_v23 = vpop.permute.xlu0 %234  ;;  %v203_v24 = vpop.permute.xlu1 %202 }
 0x10e   : > { %v268_v35 = vsel %vm257_vm4, %v267_v33, %v235_v23  ;;  %v256_v43 = vsel %vm255_vm2, %v254_v41, %v203_v24 }
 0x111   : > { %v238_v25 = vpop.permute.xlu0 %237  ;;  %v206_v26 = vpop.permute.xlu1 %205 }
 0x112   : > { %v269_v36 = vsel %vm259_vm5, %v268_v35, %v238_v25  ;;  %v258_v44 = vsel %vm257_vm4, %v256_v43, %v206_v26 }
 0x115   : > { %v244_v27 = vpop.permute.xlu0 %243  ;;  %v209_v28 = vpop.permute.xlu1 %208 }
 0x116   : > { %v260_v45 = vsel %vm259_vm5, %v258_v44, %v209_v28 }
 0x119   : > { %v216_v31 = vpop.permute.xlu0 %215  ;;  %v242_v32 = vpop.permute.xlu1 %241 }
 0x11a   : > { %v246_v34 = vsel %vm245_vm3, %v242_v32, %v244_v27 }
 0x11b   : > { %v270_v39 = vsel %vm261_vm6, %v269_v36, %v246_v34 }
 0x11d   : > { %v249_v38 = vpop.permute.xlu0 %248  ;;  %v212_v40 = vpop.permute.xlu1 %211 }
 0x11e   : > { %v271_v42 = vsel %vm263_vm7, %v270_v39, %v249_v38  ;;  %v262_v47 = vsel %vm261_vm6, %v260_v45, %v212_v40 }
 0x11f   : > { %273 = vst [vmem:[%s170_s15 + $0x8] sm:$0xff] %v271_v42 }
 0x121   : > { %v218_v46 = vpop.permute.xlu1 %217 }
 0x122   : > { %v220_v48 = vsel %vm219_vm8, %v216_v31, %v218_v46 }
 0x123   : > { %v264_v49 = vsel %vm263_vm7, %v262_v47, %v220_v48 }
 0x124   : > { %272 = vst [vmem:[%s170_s15] sm:$0xff] %v264_v49 }
 0x125 PF: > { %s13_s12 = sadd.s32 1, %s372_s12  }
 0x126   : > { %p10_p4 = scmp.ge.s32.totalorder %s13_s12, 4  }
 0x128   :  { %12 = sbr.rel (!%p10_p4) target bundleno = 1 (0x1), region = 62 }

// kernel: conv_block_forward.3
= control target key start
LH: loop header
LB: loop body
LE: loop exit
PB: predicated region body
PF: predicated region fallthrough
CT: control target
= control target key end

     0   :  { %s1000_s24 = smov 0   ;;  %s1097_s0 = inlined_call_operand.vmem [shape: bf16[2,4,326], index: 0, kind: input, shape index: {}]   ;;  %s1098_s1 = inlined_call_operand.vmem [shape: bf16[8,36], index: 1, kind: input, shape index: {}]   ;;  %s1099_s2 = inlined_call_operand.vmem [shape: f32[4,1], index: 2, kind: input, shape index: {}]   ;;  %s1100_s3 = inlined_call_operand.vmem [shape: f32[4,1], index: 3, kind: input, shape index: {}]   ;;  %s1101_s4 = inlined_call_operand.vmem [shape: f32[1,326], index: 4, kind: input, shape index: {}]   ;;  %s1102_s5 = inlined_call_operand.vmem [shape: f32[1,288], index: 5, kind: input, shape index: {}]   ;;  %s1103_s6 = inlined_call_operand.vmem [shape: bf16[2,8,326], index: 6, kind: output, shape index: {0}]   ;;  %s1104_s7 = inlined_call_operand.vmem [shape: f32[2,8,2], index: 7, kind: output, shape index: {1}]  }
   0x1 LB: > { %s856_s2 = sadd.s32 4294967295, %s945_s24   ;;  %p860_p0 = scmp.ge.s32.totalorder %s945_s24, 1  ;;  %s945_s24 = sphi %s1000_s24, %s18_s24  }
   0x2   : > { %p240_p1 = scmp.lt.s32.totalorder %s945_s24, 3 }
   0x4   : > { %p241_p2 = pnand %p860_p0, %p240_p1 }
   0x5   : > { %p276_p3 = scmp.lt.s32.totalorder (!%p241_p2), %s856_s2, 1  ;;  %v304_v0 = vlaneseq (!%p241_p2)  ;;  %v947_v1 = vmov (!%p241_p2), 1983009808   ;;  %s948_s27 = smov (!%p241_p2), 126   ;;  %vm311_vm0 = vcmask (!%p241_p2), 254976   ;;  %v952_v24 = vmov (!%p241_p2), 0.0  }
   0x6   : > { %244 = sbr.rel (%p241_p2) target bundleno = 553 (0x229), region = 44  ;;  %v302_v2 = vunpack.c.l.s4 (!%p241_p2), %v947_v1  ;;  %s949_s28 = smov (!%p241_p2), 127   ;;  %887 = vmatprep.subr.bf16.mxu1 (!%p241_p2), %v952_v24  ;;  %vm739_vm1 = vcmask (!%p241_p2), 150528   ;;  %vm957_vm2 = vmmov (!%p241_p2), 0   ;;  %v958_v42 = vmov (!%p241_p2), 0  }
   0x7   : > { %v1010_v3 = vshrl.u32 (!%p241_p2), %v304_v0, 7  ;;  %s950_s29 = smov (!%p241_p2), 110   ;;  %s951_s30 = smov (!%p241_p2), 109   ;;  %893 = vmatprep.mubr.msk.bf16.mxu1 (!%p241_p2), %vm957_vm2, %v952_v24  ;;  %652 = vmatprep.mubr.bf16.mxu0 (!%p241_p2), %v958_v42  ;;  %vm343_vm3 = vcmask (!%p241_p2), 257026   ;;  %vm336_vm4 = vcmask (!%p241_p2), 1043456   ;;  %vm369_vm5 = vcmask (!%p241_p2), 1031168  }
   0x8   : > { %v303_v4 = vunpack.c.0.s8 (!%p241_p2), %v302_v2  ;;  %s953_s8 = smov (!%p241_p2), 108   ;;  %s954_s9 = smov (!%p241_p2), 92   ;;  %vm338_vm6 = vcmask (!%p241_p2), 1039360   ;;  %vm429_vm7 = vcmask (!%p241_p2), 891904   ;;  %vm399_vm8 = vcmask (!%p241_p2), 900096  }
   0x9   : > { %s955_s10 = smov (!%p241_p2), 91   ;;  %s956_s11 = smov (!%p241_p2), 90   ;;  %vm459_vm9 = vcmask (!%p241_p2), 883712   ;;  %vm489_vm10 = vcmask (!%p241_p2), 752640   ;;  %vm519_vm11 = vcmask (!%p241_p2), 744448   ;;  %vm549_vm12 = vcmask (!%p241_p2), 736256  }
   0xa   : > { %v1014_v5 = vsub.s32 (!%p241_p2), %v303_v4, %v1010_v3  ;;  %vm610_vm13 = vcmask (!%p241_p2), 1041408   ;;  %vm606_vm14 = vcmask (!%p241_p2), 293888   ;;  %vm722_vm15 = vcmask (!%p241_p2), 261120   ;;  %s959_s20 = smov (!%p241_p2), 19  }
   0xb   : > { %vm762_vm2 = vcmask (!%p241_p2), 1043608  }
   0xd   : > { %s1106_s2 = smov (!%p276_p3, %s856_s2), 1 }
   0xe   : > { %s897_s3 = smul.u32 6, %s1106_s2  ;;  %s863_s21 = sshll.u32 %s1106_s2, 3 }
   0xf   : > { %s898_s12 = smul.u32 12, %s1106_s2 }
  0x10   : > { %s1019_s26 = scalar_lea.vmem %s1097_s0, %s897_s3  ;;  %s289_s3 = scalar_lea.vmem %s1104_s7, %s863_s21 }
  0x11   : > { %v345_v6 = vld [vmem:[%s1019_s26] sm:$0x3f]  ;;  %s1055_s15 = scalar_lea.vmem %s1103_s6, %s898_s12 }
  0x12   : > { %v313_v7 = vld [vmem:[%s1019_s26] sm:$0x3f]  ;;  %v354_v9 = vrot.slane %v345_v6, %v1014_v5  ;;  %v347_v12 = vcombine.high %v345_v6, %v345_v6  ;;  %740 = vst.msk [vmem:[%s1055_s15] sm:$0xf] %vm739_vm1, %v958_v42  ;;  %vm737_vm1 = vcmask 15360  }
  0x13   : > { %v375_v8 = vld [vmem:[%s1019_s26] sm:$0x3f]  ;;  %v329_v10 = vrot.slane %v313_v7, %v1014_v5  ;;  %v315_v14 = vcombine.low %v313_v7, %v313_v7 }
  0x14   : > { %v405_v11 = vld [vmem:[%s1019_s26] sm:$0x3f]  ;;  %362 = vrot.lane.b32.xlu1 %v354_v9, %s948_s27  ;;  %v391_v15 = vrot.slane %v375_v8, %v1014_v5  ;;  %v361_v19 = vrot.slane %v347_v12, %v1014_v5  ;;  %v377_v21 = vcombine.low %v375_v8, %v375_v8 }
  0x15   : > { %v291_v13 = vld [vmem:[%s1019_s26] sm:$0x3f]  ;;  %332 = vrot.lane.b32.xlu0 %v329_v10, %s949_s28  ;;  %v414_v16 = vrot.slane %v405_v11, %v1014_v5  ;;  %v407_v17 = vcombine.high %v405_v11, %v405_v11  ;;  %v322_v20 = vrot.slane %v315_v14, %v1014_v5 }
  0x16   : > { %864 = vst.sshfl [vmem:[#allocation3] sm:$0xf pattern:$0x76325410] %v291_v13  ;;  %v293_v18 = vcombine.high %v291_v13, %v291_v13  ;;  %v435_v22 = vld [vmem:[%s1019_s26] sm:$0x3f]  ;;  %v384_v26 = vrot.slane %v377_v21, %v1014_v5 }
  0x17   : > { %v421_v25 = vrot.slane %v407_v17, %v1014_v5  ;;  %v437_v27 = vcombine.low %v435_v22, %v435_v22  ;;  %v465_v28 = vld [vmem:[%s1019_s26] sm:$0x3f]  ;;  %v451_v29 = vrot.slane %v435_v22, %v1014_v5 }
  0x18   : > { %394 = vrot.lane.b32.xlu1 %v391_v15, %s950_s29  ;;  %v307_v23 = vrot.slane %v293_v18, %v1014_v5  ;;  %v467_v31 = vcombine.high %v465_v28, %v465_v28  ;;  %v495_v32 = vld [vmem:[%s1019_s26] sm:$0x3f]  ;;  %v474_v34 = vrot.slane %v465_v28, %v1014_v5 }
  0x19   : > { %422 = vrot.lane.b32.xlu0 %v414_v16, %s951_s30  ;;  %v444_v30 = vrot.slane %v437_v27, %v1014_v5  ;;  %v497_v35 = vcombine.low %v495_v32, %v495_v32  ;;  %v525_v36 = vld [vmem:[%s1019_s26] sm:$0x3f]  ;;  %v511_v37 = vrot.slane %v495_v32, %v1014_v5 }
  0x1a   : > { %312 = vst.msk [vmem:[#allocation3 + $0x8] sm:$0x3] %vm311_vm0, %v307_v23  ;;  %v481_v33 = vrot.slane %v467_v31, %v1014_v5  ;;  %v527_v39 = vcombine.high %v525_v36, %v525_v36  ;;  %v534_v41 = vrot.slane %v525_v36, %v1014_v5 }
  0x1b   : > { %v504_v38 = vrot.slane %v497_v35, %v1014_v5 }
  0x1c   : > { %364 = vrot.lane.b32.xlu1 %v361_v19, %s948_s27  ;;  %v541_v40 = vrot.slane %v527_v39, %v1014_v5 }
  0x1d   : > { %330 = vrot.lane.b32.xlu0 %v322_v20, %s949_s28 }
  0x20   : > { %424 = vrot.lane.b32.xlu1 %v421_v25, %s951_s30 }
  0x21   : > { %392 = vrot.lane.b32.xlu0 %v384_v26, %s950_s29 }
  0x24   : > { %454 = vrot.lane.b32.xlu1 %v451_v29, %s953_s8 }
  0x25   : > { %452 = vrot.lane.b32.xlu0 %v444_v30, %s953_s8 }
  0x28   : > { %484 = vrot.lane.b32.xlu1 %v481_v33, %s954_s9 }
  0x29   : > { %482 = vrot.lane.b32.xlu0 %v474_v34, %s954_s9 }
  0x2c   : > { %514 = vrot.lane.b32.xlu1 %v511_v37, %s955_s10 }
  0x2d   : > { %512 = vrot.lane.b32.xlu0 %v504_v38, %s955_s10 }
  0x30   : > { %544 = vrot.lane.b32.xlu1 %v541_v40, %s956_s11  ;;  %v555_v40 = vld [vmem:[%s1098_s1] sm:$0xf] }
  0x31   : > { %542 = vrot.lane.b32.xlu0 %v534_v41, %s956_s11 }
  0x86   : > { %v363_v43 = vpop.permute.xlu1 %362 }
  0x87   : > { %v333_v44 = vpop.permute.xlu0 %332  ;;  %v366_v49 = vrot.slane %v363_v43, 4 }
  0x88   : > { %344 = vst.msk [vmem:[#allocation3 + $0x8] sm:$0xc] %vm343_vm3, %v333_v44  ;;  %v335_v50 = vrot.slane %v333_v44, 4 }
  0x8a   : > { %v395_v45 = vpop.permute.xlu1 %394 }
  0x8b   : > { %v423_v46 = vpop.permute.xlu0 %422  ;;  %404 = vst.msk [vmem:[#allocation3 + $0x14] sm:$0xc] %vm343_vm3, %v395_v45  ;;  %v397_v59 = vrot.slane %v395_v45, 4  ;;  %v701_v45 = vld [vmem:[%s1102_s5] sm:$0x7] }
  0x8c   : > { %v426_v60 = vrot.slane %v423_v46, 4 }
  0x8e   : > { %v365_v47 = vpop.permute.xlu1 %364 }
  0x8f   : > { %v331_v48 = vpop.permute.xlu0 %330  ;;  %v367_v51 = vrot.slane %v365_v47, 4  ;;  %374 = vst.msk [vmem:[#allocation3 + $0x14] sm:$0x3] %vm311_vm0, %v365_v47  ;;  %v705_v47 = vsub.s32 0, %v1010_v3 }
  0x90   : > { %v334_v52 = vrot.slane %v331_v48, 4 }
  0x91   : > { %v368_v53 = vsel %vm336_vm4, %v366_v49, %v367_v51  ;;  %v706_v51 = vrot.slane %v701_v45, %v705_v47 }
  0x92   : > { %v337_v54 = vsel %vm336_vm4, %v334_v52, %v335_v50  ;;  %v370_v55 = vsel %vm369_vm5, %v363_v43, %v368_v53  ;;  %v425_v57 = vpop.permute.xlu1 %424 }
  0x93   : > { %v339_v56 = vsel %vm338_vm6, %v331_v48, %v337_v54  ;;  %v393_v58 = vpop.permute.xlu0 %392  ;;  %373 = vst [vmem:[#allocation3 + $0xc] sm:$0x33] %v370_v55  ;;  %v427_v61 = vrot.slane %v425_v57, 4  ;;  %434 = vst.msk [vmem:[#allocation3 + $0x20] sm:$0x3] %vm311_vm0, %v425_v57  ;;  %v709_v48 = vsub.s32 1, %v1010_v3 }
  0x94   : > { %342 = vst [vmem:[#allocation3] sm:$0xcc] %v339_v56  ;;  %v396_v62 = vrot.slane %v393_v58, 4  ;;  %vm766_vm6 = vcmask 412672  }
  0x95   : > { %v428_v63 = vsel %vm336_vm4, %v426_v60, %v427_v61  ;;  %v710_v53 = vrot.slane %v701_v45, %v709_v48 }
  0x96   : > { %v398_v0 = vsel %vm336_vm4, %v396_v62, %v397_v59  ;;  %v430_v1 = vsel %vm429_vm7, %v423_v46, %v428_v63  ;;  %v455_v4 = vpop.permute.xlu1 %454  ;;  %v929_v6 = vld [vmem:[#allocation3 + $0x8] ss:$12 sps:$4 sm:$0xff]   ;;  %vm768_vm7 = vcmask 568728  }
  0x97   : > { %v400_v2 = vsel %vm399_vm8, %v393_v58, %v398_v0  ;;  %v453_v5 = vpop.permute.xlu0 %452  ;;  %433 = vst [vmem:[#allocation3 + $0x18] sm:$0x33] %v430_v1  ;;  %v457_v7 = vrot.slane %v455_v4, 4  ;;  %464 = vst.msk [vmem:[#allocation3 + $0x20] sm:$0xc] %vm343_vm3, %v455_v4  ;;  %888 = vmatpush3.bf16.msra.mxu1 %v929_v6 }
  0x98   : > { %403 = vst [vmem:[#allocation3 + $0xc] sm:$0xcc] %v400_v2  ;;  %v456_v8 = vrot.slane %v453_v5, 4  ;;  %889 = vmatprep.subr.bf16.mxu1 %v952_v24 }
  0x9a   : > { %v458_v9 = vsel %vm336_vm4, %v456_v8, %v457_v7  ;;  %v485_v11 = vpop.permute.xlu1 %484 }
  0x9b   : > { %v460_v10 = vsel %vm459_vm9, %v453_v5, %v458_v9  ;;  %v483_v12 = vpop.permute.xlu0 %482  ;;  %v487_v13 = vrot.slane %v485_v11, 4  ;;  %494 = vst.msk [vmem:[#allocation3 + $0x2c] sm:$0x3] %vm311_vm0, %v485_v11  ;;  %v556_v16 = vld [vmem:[#allocation3] sm:$0xff] }
  0x9c   : > { %463 = vst [vmem:[#allocation3 + $0x18] sm:$0xcc] %v460_v10  ;;  %v486_v14 = vrot.slane %v483_v12, 4 }
  0x9e   : > { %v488_v15 = vsel %vm336_vm4, %v486_v14, %v487_v13  ;;  %v515_v18 = vpop.permute.xlu1 %514 }
  0x9f   : > { %v490_v17 = vsel %vm489_vm10, %v483_v12, %v488_v15  ;;  %v513_v19 = vpop.permute.xlu0 %512  ;;  %v558_v20 = vld [vmem:[#allocation3 + $0xc] sm:$0xff]  ;;  %v517_v22 = vrot.slane %v515_v18, 4  ;;  %524 = vst.msk [vmem:[#allocation3 + $0x2c] sm:$0xc] %vm343_vm3, %v515_v18  ;;  %vm763_vm3 = vcmask 1047556  }
  0xa0   : > { %v930_v21 = vld [vmem:[#allocation3 + $0x4] ss:$12 sps:$4 sm:$0xff]   ;;  %493 = vst [vmem:[#allocation3 + $0x24] sm:$0x33] %v490_v17  ;;  %v516_v23 = vrot.slane %v513_v19, 4  ;;  %v865_v25 = vcombine.low %v556_v16, %v558_v20  ;;  %vm764_vm5 = vmor %vm763_vm3, %vm762_vm2 }
  0xa1   : > { %620 = vmatprep.subr.bf16.mxu0 %v930_v21 }
  0xa2   : > { %v518_v26 = vsel %vm336_vm4, %v516_v23, %v517_v22  ;;  %621 = vmatpush1.bf16.msra.mxu0 %v865_v25  ;;  %v545_v28 = vpop.permute.xlu1 %544 }
  0xa3   : > { %v520_v27 = vsel %vm519_vm11, %v513_v19, %v518_v26  ;;  %v543_v29 = vpop.permute.xlu0 %542  ;;  %v547_v30 = vrot.slane %v545_v28, 4  ;;  %554 = vst.msk [vmem:[#allocation3 + $0x38] sm:$0x3] %vm311_vm0, %v545_v28  ;;  %vm735_vm0 = vcmask 7168  }
  0xa4   : > { %523 = vst [vmem:[#allocation3 + $0x24] sm:$0xcc] %v520_v27  ;;  %v546_v31 = vrot.slane %v543_v29, 4 }
  0xa6   : > { %v548_v32 = vsel %vm336_vm4, %v546_v31, %v547_v30  ;;  %v932_v34 = vld [vmem:[#allocation3 + $0x20] ss:$12 sps:$4 sm:$0xff]   ;;  %vm757_vm4 = vcmask 154624  }
  0xa7   : > { %v550_v33 = vsel %vm549_vm12, %v543_v29, %v548_v32  ;;  %890 = vmatpush3.bf16.msra.mxu1 %v932_v34 }
  0xa8   : > { %553 = vst [vmem:[#allocation3 + $0x30] sm:$0x33] %v550_v33  ;;  %891 = vmatprep.subr.bf16.mxu1 %v952_v24  ;;  %v713_v24 = vsub.s32 2, %v1010_v3 }
  0xaa   : > { %v936_v37 = vld [vmem:[#allocation3 + $0x38] ss:$0 sps:$4 sm:$0x33]   ;;  %v714_v46 = vrot.slane %v701_v45, %v713_v24 }
  0xab   : > { %v933_v35 = vld [vmem:[#allocation3 + $0x1c] ss:$12 sps:$4 sm:$0xff]   ;;  %v935_v36 = vld [vmem:[#allocation3 + $0x18] ss:$12 sps:$4 sm:$0xff]   ;;  %v618_v38 = vsel %vm610_vm13, %v936_v37, 0 }
  0xac   : > { %622 = vmatprep.subr.bf16.mxu0 %v933_v35  ;;  %892 = vmatpush3.bf16.msra.mxu1 %v618_v38 }
  0xad   : > { %623 = vmatpush1.bf16.msra.mxu0 %v935_v36 }
  0xaf   : > { %v564_v39 = vld [vmem:[#allocation3 + $0x30] sm:$0x33]  ;;  %894 = vmatmul.mubr.msk.bf16.vlgmr.msra.gmra.mrb[0].mxu1 %vm606_vm14, %v555_v40 }
  0xb0   : > { %v872_v41 = vcombine.high %v564_v39, %v564_v39  ;;  %v871_v43 = vcombine.low %v564_v39, %v564_v39 }
  0xb2   : > { %874 = vmatprep.subr.msk.bf16.mxu0 %vm610_vm13, %v872_v41  ;;  %v612_v44 = vsel %vm610_vm13, %v871_v43, 0 }
  0xb3   : > { %625 = vmatpush1.bf16.msra.mxu0 %v612_v44 }
  0xb6   : > { %875 = vmatmul.mubr.msk.bf16.vlgmr.msra.gmra.mrb[0].mxu0 %vm606_vm14, %v555_v40 }
 0x182   : > { %v695_v49 = vpop.f32.mrb[0].mxu1 }
 0x183   : > { %v720_v50 = vmul.f32 %v714_v46, %v695_v49  ;;  %v895_v52 = vpop.f32.mrb[1].mxu1 }
 0x184   : > { %v698_v54 = vpop.f32.mrb[2].mxu1 }
 0x185   : > { %v896_v55 = vpop.f32.mrb[3].mxu1  ;;  %v729_v59 = vmul.f32 %v720_v50, %v720_v50  ;;  %v723_v0 = vsel %vm722_vm15, %v720_v50, 0.0  ;;  %v882_v8 = vpack.c.bf16 %v720_v50, %v720_v50 }
 0x187   : > { %v731_v4 = vsel %vm722_vm15, %v729_v59, 0.0 }
 0x189   : > { %v654_v56 = vpop.f32.mrb[0].mxu0 }
 0x18a   : > { %v718_v57 = vmul.f32 %v706_v51, %v654_v56  ;;  %v656_v58 = vpop.f32.mrb[1].mxu0 }
 0x18b   : > { %v719_v60 = vmul.f32 %v710_v53, %v656_v58  ;;  %v658_v61 = vpop.f32.mrb[2].mxu0 }
 0x18c   : > { %v727_v62 = vmul.f32 %v718_v57, %v718_v57  ;;  %v659_v63 = vpop.f32.mrb[3].mxu0 }
 0x18d   : > { %v728_v1 = vmul.f32 %v719_v60, %v719_v60  ;;  %v721_v3 = vadd.f32 %v719_v60, %v718_v57  ;;  %v881_v2 = vpack.c.bf16 %v719_v60, %v718_v57 }
 0x18f   : > { %v724_v5 = vadd.f32 %v723_v0, %v721_v3  ;;  %v730_v6 = vadd.f32 %v728_v1, %v727_v62 }
 0x191   : > { %725 = vadd.xlane.f32.xlu0 %v724_v5  ;;  %v732_v7 = vadd.f32 %v731_v4, %v730_v6 }
 0x193   : > { %733 = vadd.xlane.f32.xlu1 %v732_v7 }
 0x1a4   : > { %754 = vrot.lane.b32.xlu1 %v882_v8, %s959_s20 }
 0x1a7   : > { %752 = vrot.lane.b32.xlu0 %v881_v2, %s959_s20 }
 0x21e   : > { %v726_v9 = vpop.xlane.xlu0 %725 }
 0x220   : > { %v734_v10 = vpop.xlane.xlu1 %733 }
 0x221   : > { %v736_v11 = vsel %vm735_vm0, %v726_v9, %v734_v10 }
 0x222   : > { %738 = vst.msk [vmem:[%s289_s3] sm:$0xff] %vm737_vm1, %v736_v11  ;;  %v753_v12 = vpop.permute.xlu0 %752 }
 0x223   : > { %v756_v13 = vrot.slane %v753_v12, 4 }
 0x224   : > { %v755_v14 = vpop.permute.xlu1 %754 }
 0x225   : > { %v758_v15 = vsel %vm757_vm4, %v756_v13, %v753_v12  ;;  %v759_v16 = vsel %vm757_vm4, %v756_v13, %v755_v14 }
 0x226   : > { %765 = vst.msk [vmem:[%s1055_s15] sm:$0xff] %vm764_vm5, %v758_v15 }
 0x227   : > { %767 = vst.msk [vmem:[%s1055_s15 + $0x8] sm:$0xf] %vm766_vm6, %v759_v16 }
 0x228   : > { %769 = vst.msk [vmem:[%s1055_s15 + $0x8] sm:$0xf] %vm768_vm7, %v958_v42 }
 0x229 PF: > { %s18_s24 = sadd.s32 1, %s945_s24  }
 0x22a   : > { %p15_p4 = scmp.ge.s32.totalorder %s18_s24, 4  }
 0x22c   :  { %17 = sbr.rel (!%p15_p4) target bundleno = 1 (0x1), region = 86 }

// kernel: conv_block_forward.4
= control target key start
LH: loop header
LB: loop body
LE: loop exit
PB: predicated region body
PF: predicated region fallthrough
CT: control target
= control target key end

     0   :  { %s946_s24 = smov 0   ;;  %s1041_s0 = inlined_call_operand.vmem [shape: bf16[2,8,326], index: 0, kind: input, shape index: {}]   ;;  %s1042_s1 = inlined_call_operand.vmem [shape: bf16[8,72], index: 1, kind: input, shape index: {}]   ;;  %s1043_s2 = inlined_call_operand.vmem [shape: f32[8,1], index: 2, kind: input, shape index: {}]   ;;  %s1044_s3 = inlined_call_operand.vmem [shape: f32[8,1], index: 3, kind: input, shape index: {}]   ;;  %s1045_s4 = inlined_call_operand.vmem [shape: f32[1,326], index: 4, kind: input, shape index: {}]   ;;  %s1046_s5 = inlined_call_operand.vmem [shape: f32[1,288], index: 5, kind: input, shape index: {}]   ;;  %s1047_s6 = inlined_call_operand.vmem [shape: f32[2,8,288], index: 6, kind: output, shape index: {0}]   ;;  %s1048_s7 = inlined_call_operand.vmem [shape: f32[2,8,2], index: 7, kind: output, shape index: {1}]  }
   0x1 LB: > { %s808_s25 = sadd.s32 4294967295, %s893_s24   ;;  %p812_p0 = scmp.ge.s32.totalorder %s893_s24, 1  ;;  %s893_s24 = sphi %s946_s24, %s18_s24  }
   0x2   : > { %p240_p1 = scmp.lt.s32.totalorder %s893_s24, 3 }
   0x4   : > { %p241_p2 = pnand %p812_p0, %p240_p1 }
   0x5   : > { %v296_v0 = vld [vmem:[%s1043_s2] sm:$0xff] (!%p241_p2)  ;;  %v895_v1 = vmov (!%p241_p2), 0   ;;  %p276_p3 = scmp.lt.s32.totalorder (!%p241_p2), %s808_s25, 1  ;;  %v319_v3 = vlaneseq (!%p241_p2)  ;;  %vm351_vm0 = vcmask (!%p241_p2), 568320   ;;  %s896_s13 = smov (!%p241_p2), 126   ;;  %v899_v33 = vmov (!%p241_p2), 0.0  }
   0x6   : > { %244 = sbr.rel (%p241_p2) target bundleno = 673 (0x2a1), region = 44  ;;  %881 = vset.pattern.permute.xlu0 (!%p241_p2), %v895_v1  ;;  %632 = vmatprep.mubr.bf16.mxu0 (!%p241_p2), %v895_v1  ;;  %v305_v2 = vld [vmem:[%s1044_s3] sm:$0xff] (!%p241_p2)  ;;  %s897_s14 = smov (!%p241_p2), 127   ;;  %vm356_vm1 = vcmask (!%p241_p2), 257024   ;;  %vm905_vm2 = vmmov (!%p241_p2), 0   ;;  %vm368_vm3 = vcmask (!%p241_p2), 1043456  }
   0x7   : > { %299 = vperm.xlu0 (!%p241_p2), %881, %v296_v0   ;;  %v966_v6 = vshrl.u32 (!%p241_p2), %v319_v3, 7  ;;  %v317_v13 = vld [vmem:[%s1045_s4] sm:$0x7] (!%p241_p2)  ;;  %s898_s15 = smov (!%p241_p2), 110   ;;  %846 = vmatprep.subr.bf16.mxu1 (!%p241_p2), %v899_v33  ;;  %s900_s16 = smov (!%p241_p2), 109   ;;  %vm370_vm4 = vcmask (!%p241_p2), 1039360  }
   0x8   : > { %s901_s17 = smov (!%p241_p2), 108   ;;  %s902_s18 = smov (!%p241_p2), 92   ;;  %856 = vmatprep.mubr.msk.bf16.mxu1 (!%p241_p2), %vm905_vm2, %v899_v33  ;;  %vm387_vm5 = vcmask (!%p241_p2), 1031168   ;;  %vm404_vm6 = vcmask (!%p241_p2), 900096   ;;  %vm421_vm7 = vcmask (!%p241_p2), 891904   ;;  %vm438_vm8 = vcmask (!%p241_p2), 883712  }
   0x9   : > { %v321_v11 = vsub.s32 (!%p241_p2), 0, %v966_v6  ;;  %v325_v12 = vsub.s32 (!%p241_p2), 1, %v966_v6  ;;  %v329_v14 = vsub.s32 (!%p241_p2), 2, %v966_v6  ;;  %s903_s19 = smov (!%p241_p2), 91   ;;  %s904_s20 = smov (!%p241_p2), 90   ;;  %vm455_vm9 = vcmask (!%p241_p2), 752640  }
   0xa   : > { %vm472_vm10 = vcmask (!%p241_p2), 744448   ;;  %vm489_vm11 = vcmask (!%p241_p2), 736256   ;;  %vm586_vm12 = vcmask (!%p241_p2), 588800   ;;  %vm702_vm13 = vcmask (!%p241_p2), 261120  }
   0xb   : > { %308 = vperm.xlu0 (!%p241_p2), %881, %v305_v2   ;;  %v322_v18 = vrot.slane (!%p241_p2), %v317_v13, %v321_v11  ;;  %v326_v19 = vrot.slane (!%p241_p2), %v317_v13, %v325_v12  ;;  %v330_v21 = vrot.slane (!%p241_p2), %v317_v13, %v329_v14  ;;  %vm715_vm14 = vcmask (!%p241_p2), 7168  }
   0xc   : > { %vm717_vm15 = vcmask (!%p241_p2), 15360  }
   0xd   : > { %s1050_s25 = smov (!%p276_p3, %s808_s25), 1 }
   0xe   : > { %s860_s30 = smul.u32 12, %s1050_s25  ;;  %s815_s8 = sshll.u32 %s1050_s25, 3 }
   0xf   : > { %s861_s27 = smul.u32 24, %s1050_s25  ;;  %s289_s11 = scalar_lea.vmem %s1048_s7, %s815_s8 }
  0x10   : > { %s280_s10 = scalar_lea.vmem %s1041_s0, %s860_s30 }
  0x11   : > { %v291_v4 = vld [vmem:[%s280_s10] sm:$0xff]  ;;  %v292_v5 = vld [vmem:[%s280_s10 + $0x8] sm:$0xf]  ;;  %s285_s30 = scalar_lea.vmem %s1047_s6, %s861_s27 }
  0x12   : > { %v293_v7 = vunpack.c.l.bf16 %v291_v4  ;;  %v294_v8 = vunpack.c.h.bf16 %v291_v4  ;;  %v295_v9 = vunpack.c.l.bf16 %v292_v5 }
  0x86   : > { %v300_v10 = vpop.permute.xlu0 %299 }
  0x87   : > { %v302_v15 = vmul.f32 %v300_v10, %v293_v7  ;;  %v303_v16 = vmul.f32 %v300_v10, %v294_v8  ;;  %v304_v17 = vmul.f32 %v300_v10, %v295_v9 }
  0x8a   : > { %v309_v20 = vpop.permute.xlu0 %308 }
  0x8b   : > { %v311_v22 = vadd.f32 %v309_v20, %v302_v15  ;;  %v312_v23 = vadd.f32 %v309_v20, %v303_v16  ;;  %v313_v24 = vadd.f32 %v309_v20, %v304_v17 }
  0x8d   : > { %v314_v25 = vmax.f32 %v311_v22, 0.0  ;;  %v315_v26 = vmax.f32 %v312_v23, 0.0  ;;  %v316_v27 = vmax.f32 %v313_v24, 0.0 }
  0x8f   : > { %v334_v28 = vmul.f32 %v322_v18, %v314_v25  ;;  %v335_v29 = vmul.f32 %v326_v19, %v315_v26  ;;  %v336_v30 = vmul.f32 %v330_v21, %v316_v27 }
  0x91   : > { %v980_v31 = vpack.c.bf16 %v335_v29, %v334_v28  ;;  %v839_v32 = vpack.c.bf16 %v336_v30, %v336_v30 }
  0x93   : > { %352 = vst.msk [vmem:[#allocation2 + $0x8] sm:$0xf] %vm351_vm0, %v839_v32  ;;  %380 = vrot.lane.b32.xlu0 %v980_v31, %s896_s13  ;;  %362 = vrot.lane.b32.xlu1 %v980_v31, %s897_s14 }
  0x97   : > { %397 = vrot.lane.b32.xlu0 %v980_v31, %s898_s15 }
  0x9a   : > { %v359_v34 = vld [vmem:[#allocation2 + $0x8] sm:$0xf] }
  0x9b   : > { %364 = vrot.lane.b32.xlu1 %v359_v34, %s897_s14  ;;  %414 = vrot.lane.b32.xlu0 %v980_v31, %s900_s16  ;;  %v354_v35 = vld [vmem:[#allocation2 + $0x8] sm:$0xf] }
  0x9c   : > { %357 = vst.msk [vmem:[#allocation3 + $0x8] sm:$0xf] %vm356_vm1, %v354_v35  ;;  %v377_v36 = vld [vmem:[#allocation2 + $0x8] sm:$0xf] }
  0x9d   : > { %v394_v37 = vld [vmem:[#allocation2 + $0x8] sm:$0xf] }
  0x9e   : > { %v411_v38 = vld [vmem:[#allocation2 + $0x8] sm:$0xf] }
  0x9f   : > { %382 = vrot.lane.b32.xlu1 %v377_v36, %s896_s13  ;;  %431 = vrot.lane.b32.xlu0 %v980_v31, %s901_s17  ;;  %v428_v39 = vld [vmem:[#allocation2 + $0x8] sm:$0xf] }
  0xa0   : > { %v445_v40 = vld [vmem:[#allocation2 + $0x8] sm:$0xf] }
  0xa1   : > { %v462_v41 = vld [vmem:[#allocation2 + $0x8] sm:$0xf] }
  0xa2   : > { %v479_v42 = vld [vmem:[#allocation2 + $0x8] sm:$0xf] }
  0xa3   : > { %399 = vrot.lane.b32.xlu1 %v394_v37, %s898_s15  ;;  %448 = vrot.lane.b32.xlu0 %v980_v31, %s902_s18 }
  0xa7   : > { %416 = vrot.lane.b32.xlu1 %v411_v38, %s900_s16  ;;  %465 = vrot.lane.b32.xlu0 %v980_v31, %s903_s19 }
  0xab   : > { %433 = vrot.lane.b32.xlu1 %v428_v39, %s901_s17  ;;  %482 = vrot.lane.b32.xlu0 %v980_v31, %s904_s20 }
  0xaf   : > { %450 = vrot.lane.b32.xlu1 %v445_v40, %s902_s18 }
  0xb3   : > { %467 = vrot.lane.b32.xlu1 %v462_v41, %s903_s19 }
  0xb7   : > { %484 = vrot.lane.b32.xlu1 %v479_v42, %s904_s20 }
 0x105   : > { %v381_v43 = vpop.permute.xlu0 %380  ;;  %v363_v44 = vpop.permute.xlu1 %362 }
 0x106   : > { %v366_v47 = vrot.slane %v363_v44, 4  ;;  %v384_v53 = vrot.slane %v381_v43, 4 }
 0x109   : > { %v398_v45 = vpop.permute.xlu0 %397 }
 0x10a   : > { %v401_v62 = vrot.slane %v398_v45, 4 }
 0x10d   : > { %v365_v46 = vpop.permute.xlu1 %364  ;;  %v415_v49 = vpop.permute.xlu0 %414 }
 0x10e   : > { %v367_v48 = vrot.slane %v365_v46, 4  ;;  %375 = vst.msk [vmem:[#allocation3 + $0x14] sm:$0xf] %vm356_vm1, %v365_v46  ;;  %v418_v3 = vrot.slane %v415_v49, 4 }
 0x110   : > { %v369_v50 = vsel %vm368_vm3, %v366_v47, %v367_v48  ;;  %v495_v47 = vld [vmem:[%s1042_s1] sm:$0xf] }
 0x111   : > { %v371_v51 = vsel %vm370_vm4, %v363_v44, %v369_v50  ;;  %v383_v52 = vpop.permute.xlu1 %382  ;;  %v432_v59 = vpop.permute.xlu0 %431 }
 0x112   : > { %v385_v54 = vrot.slane %v383_v52, 4  ;;  %392 = vst.msk [vmem:[#allocation3 + $0x20] sm:$0xf] %vm356_vm1, %v383_v52  ;;  %v819_v55 = vcombine.high %v980_v31, %v371_v51  ;;  %v818_v56 = vcombine.low %v980_v31, %v371_v51  ;;  %v435_v16 = vrot.slane %v432_v59, 4 }
 0x114   : > { %v386_v57 = vsel %vm368_vm3, %v384_v53, %v385_v54  ;;  %600 = vmatprep.subr.bf16.mxu0 %v819_v55 }
 0x115   : > { %v388_v58 = vsel %vm387_vm5, %v381_v43, %v386_v57  ;;  %v400_v60 = vpop.permute.xlu1 %399  ;;  %v882_v61 = vld [vmem:[#allocation3 + $0x8] ss:$12 sps:$4 sm:$0xff]   ;;  %601 = vmatpush1.bf16.msra.mxu0 %v818_v56  ;;  %v449_v8 = vpop.permute.xlu0 %448 }
 0x116   : > { %v402_v63 = vrot.slane %v400_v60, 4  ;;  %409 = vst.msk [vmem:[#allocation3 + $0x2c] sm:$0xf] %vm356_vm1, %v400_v60  ;;  %847 = vmatpush3.bf16.msra.mxu1 %v882_v61  ;;  %v452_v22 = vrot.slane %v449_v8, 4 }
 0x117   : > { %848 = vmatprep.subr.bf16.mxu1 %v899_v33 }
 0x118   : > { %v403_v0 = vsel %vm368_vm3, %v401_v62, %v402_v63 }
 0x119   : > { %v405_v1 = vsel %vm404_vm6, %v398_v45, %v403_v0  ;;  %v417_v2 = vpop.permute.xlu1 %416  ;;  %v466_v19 = vpop.permute.xlu0 %465 }
 0x11a   : > { %v419_v4 = vrot.slane %v417_v2, 4  ;;  %426 = vst.msk [vmem:[#allocation3 + $0x38] sm:$0xf] %vm356_vm1, %v417_v2  ;;  %v822_v5 = vcombine.high %v388_v58, %v405_v1  ;;  %v821_v7 = vcombine.low %v388_v58, %v405_v1  ;;  %v469_v30 = vrot.slane %v466_v19, 4 }
 0x11c   : > { %v420_v9 = vsel %vm368_vm3, %v418_v3, %v419_v4  ;;  %602 = vmatprep.subr.bf16.mxu0 %v822_v5 }
 0x11d   : > { %v422_v10 = vsel %vm421_vm7, %v415_v49, %v420_v9  ;;  %v434_v13 = vpop.permute.xlu1 %433  ;;  %v883_v15 = vld [vmem:[#allocation3 + $0x20] ss:$12 sps:$4 sm:$0xff]   ;;  %603 = vmatpush1.bf16.msra.mxu0 %v821_v7  ;;  %v483_v32 = vpop.permute.xlu0 %482 }
 0x11e   : > { %v436_v17 = vrot.slane %v434_v13, 4  ;;  %443 = vst.msk [vmem:[#allocation3 + $0x44] sm:$0xf] %vm356_vm1, %v434_v13  ;;  %849 = vmatpush3.bf16.msra.mxu1 %v883_v15  ;;  %v486_v37 = vrot.slane %v483_v32, 4 }
 0x11f   : > { %850 = vmatprep.subr.bf16.mxu1 %v899_v33 }
 0x120   : > { %v437_v18 = vsel %vm368_vm3, %v435_v16, %v436_v17 }
 0x121   : > { %v439_v20 = vsel %vm438_vm8, %v432_v59, %v437_v18  ;;  %v451_v21 = vpop.permute.xlu1 %450 }
 0x122   : > { %v453_v23 = vrot.slane %v451_v21, 4  ;;  %460 = vst.msk [vmem:[#allocation3 + $0x50] sm:$0xf] %vm356_vm1, %v451_v21  ;;  %v825_v24 = vcombine.high %v422_v10, %v439_v20  ;;  %v824_v25 = vcombine.low %v422_v10, %v439_v20 }
 0x124   : > { %v454_v26 = vsel %vm368_vm3, %v452_v22, %v453_v23  ;;  %604 = vmatprep.subr.bf16.mxu0 %v825_v24 }
 0x125   : > { %v456_v27 = vsel %vm455_vm9, %v449_v8, %v454_v26  ;;  %v468_v28 = vpop.permute.xlu1 %467  ;;  %v884_v29 = vld [vmem:[#allocation3 + $0x38] ss:$12 sps:$4 sm:$0xff]   ;;  %605 = vmatpush1.bf16.msra.mxu0 %v824_v25 }
 0x126   : > { %v470_v31 = vrot.slane %v468_v28, 4  ;;  %477 = vst.msk [vmem:[#allocation3 + $0x5c] sm:$0xf] %vm356_vm1, %v468_v28  ;;  %851 = vmatpush3.bf16.msra.mxu1 %v884_v29 }
 0x127   : > { %852 = vmatprep.subr.bf16.mxu1 %v899_v33 }
 0x128   : > { %v471_v34 = vsel %vm368_vm3, %v469_v30, %v470_v31 }
 0x129   : > { %v473_v35 = vsel %vm472_vm10, %v466_v19, %v471_v34  ;;  %v485_v36 = vpop.permute.xlu1 %484 }
 0x12a   : > { %v487_v38 = vrot.slane %v485_v36, 4  ;;  %494 = vst.msk [vmem:[#allocation3 + $0x68] sm:$0xf] %vm356_vm1, %v485_v36  ;;  %v828_v39 = vcombine.high %v456_v27, %v473_v35  ;;  %v827_v40 = vcombine.low %v456_v27, %v473_v35 }
 0x12c   : > { %v488_v41 = vsel %vm368_vm3, %v486_v37, %v487_v38  ;;  %606 = vmatprep.subr.bf16.mxu0 %v828_v39 }
 0x12d   : > { %v490_v42 = vsel %vm489_vm11, %v483_v32, %v488_v41  ;;  %v885_v43 = vld [vmem:[#allocation3 + $0x50] ss:$12 sps:$4 sm:$0xff]   ;;  %607 = vmatpush1.bf16.msra.mxu0 %v827_v40 }
 0x12e   : > { %v831_v44 = vcombine.high %v490_v42, %v490_v42  ;;  %v830_v45 = vcombine.low %v490_v42, %v490_v42  ;;  %853 = vmatpush3.bf16.msra.mxu1 %v885_v43 }
 0x12f   : > { %854 = vmatprep.subr.bf16.mxu1 %v899_v33  ;;  %v681_v33 = vld [vmem:[%s1046_s5] sm:$0x7] }
 0x130   : > { %833 = vmatprep.subr.msk.bf16.mxu0 %vm368_vm3, %v831_v44  ;;  %v592_v46 = vsel %vm368_vm3, %v830_v45, 0  ;;  %v686_v50 = vrot.slane %v681_v33, %v321_v11  ;;  %v690_v51 = vrot.slane %v681_v33, %v325_v12  ;;  %v694_v52 = vrot.slane %v681_v33, %v329_v14 }
 0x131   : > { %v886_v48 = vld [vmem:[#allocation3 + $0x68] ss:$0 sps:$4 sm:$0xff]   ;;  %609 = vmatpush1.bf16.msra.mxu0 %v592_v46 }
 0x132   : > { %v598_v49 = vsel %vm368_vm3, %v886_v48, 0 }
 0x133   : > { %855 = vmatpush3.bf16.msra.mxu1 %v598_v49 }
 0x134   : > { %834 = vmatmul.mubr.msk.bf16.vlgmr.msra.gmra.mrb[0].mxu0 %vm586_vm12, %v495_v47 }
 0x136   : > { %857 = vmatmul.mubr.msk.bf16.vlgmr.msra.gmra.mrb[0].mxu1 %vm586_vm12, %v495_v47 }
 0x207   : > { %v634_v53 = vpop.f32.mrb[0].mxu0 }
 0x208   : > { %v698_v54 = vmul.f32 %v686_v50, %v634_v53  ;;  %v636_v55 = vpop.f32.mrb[1].mxu0 }
 0x209   : > { %v699_v56 = vmul.f32 %v690_v51, %v636_v55  ;;  %v638_v57 = vpop.f32.mrb[2].mxu0  ;;  %v675_v58 = vpop.f32.mrb[0].mxu1 }
 0x20a   : > { %v707_v59 = vmul.f32 %v698_v54, %v698_v54  ;;  %719 = vst [vmem:[%s285_s30] sm:$0xff] %v698_v54  ;;  %v639_v60 = vpop.f32.mrb[3].mxu0  ;;  %v700_v11 = vmul.f32 %v694_v52, %v675_v58  ;;  %v858_v12 = vpop.f32.mrb[1].mxu1 }
 0x20b   : > { %v708_v61 = vmul.f32 %v699_v56, %v699_v56  ;;  %720 = vst [vmem:[%s285_s30 + $0x8] sm:$0xff] %v699_v56  ;;  %v701_v6 = vadd.f32 %v699_v56, %v698_v54  ;;  %v678_v14 = vpop.f32.mrb[2].mxu1 }
 0x20c   : > { %v859_v62 = vpop.f32.mrb[3].mxu1  ;;  %v703_v63 = vsel %vm702_vm13, %v700_v11, 0.0  ;;  %721 = vst.msk [vmem:[%s285_s30 + $0x10] sm:$0xff] %vm702_vm13, %v700_v11  ;;  %v709_v0 = vmul.f32 %v700_v11, %v700_v11 }
 0x20d   : > { %v710_v1 = vadd.f32 %v708_v61, %v707_v59  ;;  %v704_v2 = vadd.f32 %v703_v63, %v701_v6 }
 0x20e   : > { %v711_v3 = vsel %vm702_vm13, %v709_v0, 0.0 }
 0x20f   : > { %705 = vadd.xlane.f32.xlu0 %v704_v2  ;;  %v712_v4 = vadd.f32 %v711_v3, %v710_v1 }
 0x211   : > { %713 = vadd.xlane.f32.xlu1 %v712_v4 }
 0x29c   : > { %v706_v5 = vpop.xlane.xlu0 %705 }
 0x29e   : > { %v714_v7 = vpop.xlane.xlu1 %713 }
 0x29f   : > { %v716_v8 = vsel %vm715_vm14, %v706_v5, %v714_v7 }
 0x2a0   : > { %718 = vst.msk [vmem:[%s289_s11] sm:$0xff] %vm717_vm15, %v716_v8 }
 0x2a1 PF: > { %s18_s24 = sadd.s32 1, %s893_s24  }
 0x2a2   : > { %p15_p4 = scmp.ge.s32.totalorder %s18_s24, 4  }
 0x2a4   :  { %17 = sbr.rel (!%p15_p4) target bundleno = 1 (0x1), region = 86 }

</bundles_post_ra>
